<compile_context>
chip_gen: v6e
topology: v6e:2x2x1
jax: 0.10.0
libtpu: 0.0.40
codegen_flags: <defaults>
</compile_context>

<pallas_src>
import functools

import numpy as np
import jax
import jax.numpy as jnp
from jax.experimental import pallas as pl
from jax.experimental.pallas import tpu as pltpu


def _round_up(v, m):
    return -(-v // m) * m


# ----------------------------------------------------------------------------
# Fused per-tree-block kernel: W_iou projection + bottom-up level propagation
# ----------------------------------------------------------------------------
def _tree_lstm_kernel(x_ref, w_iou_ref, w_cat_ref, b_f_ref, b_iou_ref,
                      h_out_ref, iou_scr, h_scr, c_scr,
                      *, depth, n_ary, h_pad, t_block):
    nh = n_ary * h_pad

    # iou0 = W_iou(x) + b_iou for every node of this tree block (one MXU
    # matmul, bf16 operands / f32 accumulate; bias broadcast hoisted here).
    iou_scr[...] = (
        jnp.dot(x_ref[...], w_iou_ref[...], preferred_element_type=jnp.float32)
        + b_iou_ref[...])

    w_cat = w_cat_ref[...]          # [n_ary*h_pad, (n_ary+3)*h_pad] bf16
    b_f = b_f_ref[...]              # [1, n_ary*h_pad] f32

    # Row layout inside the block: level-major; within a level rows are
    # (child-slot, parent-position, tree)-major, so the child gather for each
    # slot k is the contiguous, 8-sublane-aligned slice [k*rows, (k+1)*rows).
    for d in reversed(range(depth)):                       # leaves -> root
        rows = t_block * (n_ary ** d)                      # rows at this level
        base = t_block * ((n_ary ** d - 1) // (n_ary - 1))
        iou0_d = iou_scr[base:base + rows, :]              # [rows, 3*h_pad]

        if d == depth - 1:
            # Leaf level: no children -> iou = W_iou(x)+b_iou, c = i*u.
            iou = iou0_d
            c_sum = None
        else:
            # Fused (U_f | U_iou) matmul, one per child slot (K = h_pad = 128).
            # TODO(synk): on v6e/v7x a single K = n_ary*h_pad matmul (children
            # written into lane bands of a scratch) would double MXU fill.
            z = jnp.dot(h_scr[0:rows, :].astype(jnp.bfloat16),
                        w_cat[0:h_pad, :],
                        preferred_element_type=jnp.float32)
            for k in range(1, n_ary):
                z = z + jnp.dot(
                    h_scr[k * rows:(k + 1) * rows, :].astype(jnp.bfloat16),
                    w_cat[k * h_pad:(k + 1) * h_pad, :],
                    preferred_element_type=jnp.float32)

            f = jax.nn.sigmoid(z[:, :nh] + b_f)            # forget gates
            c_sum = f[:, 0:h_pad] * c_scr[0:rows, :]
            for k in range(1, n_ary):
                c_sum = c_sum + (f[:, k * h_pad:(k + 1) * h_pad]
                                 * c_scr[k * rows:(k + 1) * rows, :])
            iou = iou0_d + z[:, nh:]                       # [rows, 3*h_pad]

        # Gate math in f32 (v5e has no bf16 VPU/EUP).
        i = jax.nn.sigmoid(iou[:, 0 * h_pad:1 * h_pad])
        o = jax.nn.sigmoid(iou[:, 1 * h_pad:2 * h_pad])
        u = jnp.tanh(iou[:, 2 * h_pad:3 * h_pad])

        c = i * u if c_sum is None else i * u + c_sum
        h = o * jnp.tanh(c)

        h_out_ref[base:base + rows, :] = h.astype(h_out_ref.dtype)
        if d > 0:
            # Stash this level's state for the parent level's child gather.
            h_scr[0:rows, :] = h
            c_scr[0:rows, :] = c


# ----------------------------------------------------------------------------
# Static layout helpers (all index math is numpy at trace time)
# ----------------------------------------------------------------------------
def _per_tree_level_orders(depth, n_ary):
    """Per-level node-id order (child-slot-major) inside one tree."""
    orders = [[0]]
    for _ in range(1, depth):
        prev = orders[-1]
        nxt = []
        for k in range(n_ary):
            nxt.extend(n_ary * n + k + 1 for n in prev)
        orders.append(nxt)
    return orders


def _build_layout(depth, n_ary, t_block):
    """Block-row layout: level-major, within level (position, tree) with tree
    fastest -> per-level child gathers are contiguous static slices."""
    orders = _per_tree_level_orders(depth, n_ary)
    npt = sum(len(o) for o in orders)
    row_tree, row_node = [], []
    for order in orders:
        for node in order:
            for t in range(t_block):
                row_tree.append(t)
                row_node.append(node)
    row_tree = np.asarray(row_tree, np.int32)
    row_node = np.asarray(row_node, np.int32)
    inv = np.empty((t_block, npt), np.int32)
    inv[row_tree, row_node] = np.arange(row_node.shape[0], dtype=np.int32)
    return jnp.asarray(row_tree), jnp.asarray(row_node), jnp.asarray(inv)


def _pad_banded(w, n_row_blk, row, row_pad, n_col_blk, col, col_pad):
    """Zero-pad each (row, col) band of a block matrix up to (row_pad, col_pad)."""
    w = w.reshape(n_row_blk, row, n_col_blk, col)
    w = jnp.pad(w, ((0, 0), (0, row_pad - row), (0, 0), (0, col_pad - col)))
    return w.reshape(n_row_blk * row_pad, n_col_blk * col_pad)


def _pad_bias(b, n_blk, col, col_pad):
    b = b.reshape(1, n_blk, col)
    b = jnp.pad(b, ((0, 0), (0, 0), (0, col_pad - col)))
    return b.reshape(1, n_blk * col_pad)


# ----------------------------------------------------------------------------
# Wrapper: padding, weight fusion, static permutations, pallas_call
# ----------------------------------------------------------------------------
def tree_lstm_forward(x, params, *, num_trees, depth, n_ary, h_size,
                      num_stacks, t_block=8):
    x_size = x.shape[-1]
    npt = (n_ary ** depth - 1) // (n_ary - 1)              # nodes per tree

    h_pad = _round_up(h_size, 128)                         # lane-dense gates/stores
    x_pad = _round_up(x_size, 128)
    t_block = _round_up(max(int(t_block), 1), 8)           # 8-sublane aligned bases

    num_trees_pad = _round_up(num_trees, t_block)
    num_blocks = num_trees_pad // t_block
    block_rows = t_block * npt
    leaf_rows = t_block * (n_ary ** (depth - 1))

    row_tree, row_node, inv = _build_layout(depth, n_ary, t_block)

    # ---- input: pad feature lanes + tree count, permute to kernel layout ----
    x3 = x.reshape(num_trees, npt, x_size).astype(jnp.bfloat16)
    x3 = jnp.pad(x3, ((0, num_trees_pad - num_trees), (0, 0), (0, x_pad - x_size)))
    x4 = x3.reshape(num_blocks, t_block, npt, x_pad)
    x_kernel = x4[:, row_tree, row_node, :]                # (num_blocks, block_rows, x_pad)

    # ---- weights: zero-pad every h-sized gate band to h_pad lanes, fuse -----
    w_iou = _pad_banded(params["W_iou_T"], 1, x_size, x_pad,
                        3, h_size, h_pad).astype(jnp.bfloat16)         # [x_pad, 3*h_pad]
    u_f = _pad_banded(params["U_f_T"], n_ary, h_size, h_pad,
                      n_ary, h_size, h_pad)
    u_iou = _pad_banded(params["U_iou_T"], n_ary, h_size, h_pad,
                        3, h_size, h_pad)
    w_cat = jnp.concatenate([u_f, u_iou], axis=1).astype(jnp.bfloat16)  # [n*h_pad,(n+3)*h_pad]
    b_f = _pad_bias(params["b_f"], n_ary, h_size, h_pad).astype(jnp.float32)
    b_iou = _pad_bias(params["b_iou"], 3, h_size, h_pad).astype(jnp.float32)

    kernel = functools.partial(_tree_lstm_kernel, depth=depth, n_ary=n_ary,
                               h_pad=h_pad, t_block=t_block)

    # NOTE: weight in_specs are grid-invariant; single-buffering them
    # (pipeline_mode=pl.Buffered(1)) would halve their VMEM at large h.
    h_kernel = pl.pallas_call(
        kernel,
        grid=(num_blocks,),
        in_specs=[
            pl.BlockSpec((None, block_rows, x_pad), lambda b: (b, 0, 0)),      # per-block x
            pl.BlockSpec((x_pad, 3 * h_pad), lambda b: (0, 0)),                # W_iou^T
            pl.BlockSpec((n_ary * h_pad, (n_ary + 3) * h_pad),
                         lambda b: (0, 0)),                                    # [U_f|U_iou]^T
            pl.BlockSpec((1, n_ary * h_pad), lambda b: (0, 0)),                # b_f
            pl.BlockSpec((1, 3 * h_pad), lambda b: (0, 0)),                    # b_iou
        ],
        out_specs=pl.BlockSpec((None, block_rows, h_pad), lambda b: (b, 0, 0)),
        out_shape=jax.ShapeDtypeStruct((num_blocks, block_rows, h_pad),
                                       jnp.float32),
        scratch_shapes=[
            pltpu.VMEM((block_rows, 3 * h_pad), jnp.float32),   # W_iou(x)+b_iou
            pltpu.VMEM((leaf_rows, h_pad), jnp.float32),        # h carry (prev level)
            pltpu.VMEM((leaf_rows, h_pad), jnp.float32),        # c carry (prev level)
        ],
        compiler_params=pltpu.CompilerParams(
            dimension_semantics=("parallel",)),                 # tree blocks across TCs
    )(x_kernel, w_iou, w_cat, b_f, b_iou)

    # ---- back to (tree, BFS node) order, drop lane/tree padding -------------
    h4 = h_kernel[:, inv, :]                                # (num_blocks, t_block, npt, h_pad)
    h_bfs = h4.reshape(num_trees_pad, npt, h_pad)[:num_trees, :, :h_size]

    # All stacks are numerically identical: the PyTorch forward computes iou
    # from the ORIGINAL batch's x for every stack, starts from zero h/c, and
    # the cell never reads ndata['x'] -> compute once, replicate.
    return [h_bfs for _ in range(num_stacks)]


# ----------------------------------------------------------------------------
# Pure-JAX reference (same math / same bf16-operand matmul precision)
# ----------------------------------------------------------------------------
def _reference_forward(x, params, *, num_trees, depth, n_ary, h_size, num_stacks):
    npt = (n_ary ** depth - 1) // (n_ary - 1)
    N = num_trees * npt
    bf = jnp.bfloat16
    w_iou = params["W_iou_T"].astype(bf)
    u_f = params["U_f_T"].astype(bf)
    u_iou = params["U_iou_T"].astype(bf)

    iou0 = jnp.dot(x.astype(bf), w_iou, preferred_element_type=jnp.float32)
    h_all = jnp.zeros((N, h_size), jnp.float32)
    c_all = jnp.zeros((N, h_size), jnp.float32)

    levels = [list(range((n_ary ** d - 1) // (n_ary - 1),
                         (n_ary ** (d + 1) - 1) // (n_ary - 1)))
              for d in reversed(range(depth))]
    for li, local_nodes in enumerate(levels):
        node_idx = jnp.array([t * npt + n for t in range(num_trees)
                              for n in local_nodes], jnp.int32)
        L = len(local_nodes) * num_trees
        if li == 0:
            hcat = jnp.zeros((L, n_ary * h_size), jnp.float32)
            ccat = jnp.zeros((L, n_ary * h_size), jnp.float32)
        else:
            child_idx = jnp.array(
                [[t * npt + n_ary * n + k + 1 for k in range(n_ary)]
                 for t in range(num_trees) for n in local_nodes], jnp.int32)
            hcat = h_all[child_idx].reshape(L, n_ary * h_size)
            ccat = c_all[child_idx].reshape(L, n_ary * h_size)
        f = jax.nn.sigmoid(jnp.dot(hcat.astype(bf), u_f,
                                   preferred_element_type=jnp.float32)
                           + params["b_f"])
        c_sum = (f * ccat).reshape(L, n_ary, h_size).sum(axis=1)
        iou = (iou0[node_idx]
               + jnp.dot(hcat.astype(bf), u_iou, preferred_element_type=jnp.float32)
               + params["b_iou"])
        i = jax.nn.sigmoid(iou[:, :h_size])
        o = jax.nn.sigmoid(iou[:, h_size:2 * h_size])
        u = jnp.tanh(iou[:, 2 * h_size:])
        c = i * u + c_sum
        h_all = h_all.at[node_idx].set(o * jnp.tanh(c))
        c_all = c_all.at[node_idx].set(c)
    out = h_all.reshape(num_trees, npt, h_size)
    return [out for _ in range(num_stacks)]


# ----------------------------------------------------------------------------
if __name__ == "__main__":
    x_size = 32
    h_size = 32
    n_ary = 2
    num_stacks = 2
    num_trees = 10           # not a multiple of t_block -> exercises tree padding
    depth = 3                # perfect binary tree -> 7 nodes per tree
    npt = 2 ** depth - 1
    N = num_trees * npt

    key = jax.random.PRNGKey(0)
    kx, k1, k2, k3, k4 = jax.random.split(key, 5)

    def _uinit(k, shape, fan_in):
        bound = 1.0 / (fan_in ** 0.5)
        return jax.random.uniform(k, shape, jnp.float32, -bound, bound)

    params = {
        "W_iou_T": _uinit(k1, (x_size, 3 * h_size), x_size),
        "U_iou_T": _uinit(k2, (n_ary * h_size, 3 * h_size), n_ary * h_size),
        "b_iou":   jnp.zeros((1, 3 * h_size), jnp.float32),
        "U_f_T":   _uinit(k3, (n_ary * h_size, n_ary * h_size), n_ary * h_size),
        "b_f":     _uinit(k4, (1, n_ary * h_size), n_ary * h_size),
    }

    x = jax.random.normal(kx, (N, x_size), jnp.float32)   # node features (BFS order)

    outs = tree_lstm_forward(x, params, num_trees=num_trees, depth=depth,
                             n_ary=n_ary, h_size=h_size, num_stacks=num_stacks,
                             t_block=8)
    outs = [jax.block_until_ready(o) for o in outs]

    refs = _reference_forward(x, params, num_trees=num_trees, depth=depth,
                              n_ary=n_ary, h_size=h_size, num_stacks=num_stacks)
    for o, r in zip(outs, refs):
        assert o.shape == (num_trees, npt, h_size)
        assert jnp.allclose(o, r, atol=1e-4, rtol=1e-4), \
            float(jnp.max(jnp.abs(o - r)))

    # TODO(synk): dgl.batch / deepcopy graph plumbing and stochastic dropout
    # (p>0, training mode) have no Pallas equivalent; topology is a static
    # perfect n-ary tree in BFS node order.  Matmul operands are bf16
    # (f32 accumulation); vs an f32 PyTorch reference expect ~1e-3-level
    # relative differences.
    print("KERNEL_OK")
</pallas_src>

<mosaic_0001>
module attributes {stable_mosaic.version = 11 : i64} {
  func.func @_tree_lstm_kernel(%arg0: i32, %arg1: memref<1x56x128xbf16, #tpu.memory_space<vmem>>, %arg2: memref<128x384xbf16, #tpu.memory_space<vmem>>, %arg3: memref<256x640xbf16, #tpu.memory_space<vmem>>, %arg4: memref<1x256xf32, #tpu.memory_space<vmem>>, %arg5: memref<1x384xf32, #tpu.memory_space<vmem>>, %arg6: memref<1x56x128xf32, #tpu.memory_space<vmem>>, %arg7: memref<56x384xf32, #tpu.memory_space<vmem>>, %arg8: memref<32x128xf32, #tpu.memory_space<vmem>>, %arg9: memref<32x128xf32, #tpu.memory_space<vmem>>) attributes {dimension_semantics = [#tpu.dimension_semantics<parallel>], iteration_bounds = array<i64: 2>, scalar_prefetch = 0 : i64, scratch_operands = 3 : i64, tpu.core_type = #tpu.core_type<tc>, window_params = [{transform_indices = @transform_0, window_bounds = array<i64: 1, 56, 128>}, {pipeline_mode = #tpu.pipeline_mode<synchronous>, transform_indices = @transform_1, window_bounds = array<i64: 128, 384>}, {pipeline_mode = #tpu.pipeline_mode<synchronous>, transform_indices = @transform_2, window_bounds = array<i64: 256, 640>}, {pipeline_mode = #tpu.pipeline_mode<synchronous>, transform_indices = @transform_3, window_bounds = array<i64: 1, 256>}, {pipeline_mode = #tpu.pipeline_mode<synchronous>, transform_indices = @transform_4, window_bounds = array<i64: 1, 384>}, {transform_indices = @transform_5, window_bounds = array<i64: 1, 56, 128>}]} {
    %c0 = arith.constant 0 : index
    %c0_0 = arith.constant 0 : index
    %c0_1 = arith.constant 0 : index
    %0 = vector.load %arg1[%c0, %c0_0, %c0_1] : memref<1x56x128xbf16, #tpu.memory_space<vmem>>, vector<1x56x128xbf16>
    %1 = vector.shape_cast %0 : vector<1x56x128xbf16> to vector<56x128xbf16>
    %c0_2 = arith.constant 0 : index
    %c0_3 = arith.constant 0 : index
    %2 = vector.load %arg2[%c0_2, %c0_3] : memref<128x384xbf16, #tpu.memory_space<vmem>>, vector<128x384xbf16>
    %cst = arith.constant dense<0.000000e+00> : vector<56x384xf32>
    %3 = tpu.matmul %1, %2, %cst {dimension_numbers = #tpu.dot_dimension_numbers<[1], [0], [0], [1], [0, 0, 1, 1], [], []>} : vector<56x128xbf16>, vector<128x384xbf16>, vector<56x384xf32> -> vector<56x384xf32>
    %c0_4 = arith.constant 0 : index
    %c0_5 = arith.constant 0 : index
    %4 = vector.load %arg5[%c0_4, %c0_5] : memref<1x384xf32, #tpu.memory_space<vmem>>, vector<1x384xf32>
    %5 = vector.broadcast %4 : vector<1x384xf32> to vector<56x384xf32>
    %6 = arith.addf %3, %5 : vector<56x384xf32>
    %c0_6 = arith.constant 0 : index
    %c0_7 = arith.constant 0 : index
    %7 = vector.load %arg7[%c0_6, %c0_7] : memref<56x384xf32, #tpu.memory_space<vmem>>, vector<56x384xf32>
    tpu.vector_store %arg7[%c0_6, %c0_7], %6 {strides = array<i32>} : memref<56x384xf32, #tpu.memory_space<vmem>>, vector<56x384xf32>,
    %c0_8 = arith.constant 0 : index
    %c0_9 = arith.constant 0 : index
    %8 = vector.load %arg3[%c0_8, %c0_9] : memref<256x640xbf16, #tpu.memory_space<vmem>>, vector<256x640xbf16>
    %c0_10 = arith.constant 0 : index
    %c0_11 = arith.constant 0 : index
    %9 = vector.load %arg4[%c0_10, %c0_11] : memref<1x256xf32, #tpu.memory_space<vmem>>, vector<1x256xf32>
    %c24 = arith.constant 24 : index
    %c0_12 = arith.constant 0 : index
    %10 = vector.load %arg7[%c24, %c0_12] : memref<56x384xf32, #tpu.memory_space<vmem>>, vector<32x384xf32>
    %11 = vector.extract_strided_slice %10 {offsets = [0, 0], sizes = [32, 128], strides = [1, 1]} : vector<32x384xf32> to vector<32x128xf32>
    %12 = arith.negf %11 : vector<32x128xf32>
    %13 = math.exp %12 : vector<32x128xf32>
    %cst_13 = arith.constant 1.000000e+00 : f32
    %14 = vector.broadcast %cst_13 : f32 to vector<32x128xf32>
    %15 = arith.addf %14, %13 : vector<32x128xf32>
    %16 = arith.divf %14, %15 : vector<32x128xf32>
    %17 = vector.extract_strided_slice %10 {offsets = [0, 128], sizes = [32, 128], strides = [1, 1]} : vector<32x384xf32> to vector<32x128xf32>
    %18 = arith.negf %17 : vector<32x128xf32>
    %19 = math.exp %18 : vector<32x128xf32>
    %cst_14 = arith.constant 1.000000e+00 : f32
    %20 = vector.broadcast %cst_14 : f32 to vector<32x128xf32>
    %21 = arith.addf %20, %19 : vector<32x128xf32>
    %22 = arith.divf %20, %21 : vector<32x128xf32>
    %23 = vector.extract_strided_slice %10 {offsets = [0, 256], sizes = [32, 128], strides = [1, 1]} : vector<32x384xf32> to vector<32x128xf32>
    %24 = math.tanh %23 : vector<32x128xf32>
    %25 = arith.mulf %16, %24 : vector<32x128xf32>
    %26 = math.tanh %25 : vector<32x128xf32>
    %27 = arith.mulf %22, %26 : vector<32x128xf32>
    %c0_15 = arith.constant 0 : index
    %c24_16 = arith.constant 24 : index
    %c0_17 = arith.constant 0 : index
    %28 = vector.load %arg6[%c0_15, %c24_16, %c0_17] : memref<1x56x128xf32, #tpu.memory_space<vmem>>, vector<1x32x128xf32>
    %29 = vector.shape_cast %28 : vector<1x32x128xf32> to vector<32x128xf32>
    %30 = vector.shape_cast %27 : vector<32x128xf32> to vector<1x32x128xf32>
    tpu.vector_store %arg6[%c0_15, %c24_16, %c0_17], %30 {strides = array<i32>} : memref<1x56x128xf32, #tpu.memory_space<vmem>>, vector<1x32x128xf32>,
    %c0_18 = arith.constant 0 : index
    %c0_19 = arith.constant 0 : index
    %31 = vector.load %arg8[%c0_18, %c0_19] : memref<32x128xf32, #tpu.memory_space<vmem>>, vector<32x128xf32>
    tpu.vector_store %arg8[%c0_18, %c0_19], %27 {strides = array<i32>} : memref<32x128xf32, #tpu.memory_space<vmem>>, vector<32x128xf32>,
    %c0_20 = arith.constant 0 : index
    %c0_21 = arith.constant 0 : index
    %32 = vector.load %arg9[%c0_20, %c0_21] : memref<32x128xf32, #tpu.memory_space<vmem>>, vector<32x128xf32>
    tpu.vector_store %arg9[%c0_20, %c0_21], %25 {strides = array<i32>} : memref<32x128xf32, #tpu.memory_space<vmem>>, vector<32x128xf32>,
    %c8 = arith.constant 8 : index
    %c0_22 = arith.constant 0 : index
    %33 = vector.load %arg7[%c8, %c0_22] : memref<56x384xf32, #tpu.memory_space<vmem>>, vector<16x384xf32>
    %c0_23 = arith.constant 0 : index
    %c0_24 = arith.constant 0 : index
    %34 = vector.load %arg8[%c0_23, %c0_24] : memref<32x128xf32, #tpu.memory_space<vmem>>, vector<16x128xf32>
    %35 = arith.truncf %34 : vector<16x128xf32> to vector<16x128xbf16>
    %36 = vector.extract_strided_slice %8 {offsets = [0, 0], sizes = [128, 640], strides = [1, 1]} : vector<256x640xbf16> to vector<128x640xbf16>
    %cst_25 = arith.constant dense<0.000000e+00> : vector<16x640xf32>
    %37 = tpu.matmul %35, %36, %cst_25 {dimension_numbers = #tpu.dot_dimension_numbers<[1], [0], [0], [1], [0, 0, 1, 1], [], []>} : vector<16x128xbf16>, vector<128x640xbf16>, vector<16x640xf32> -> vector<16x640xf32>
    %c16 = arith.constant 16 : index
    %c0_26 = arith.constant 0 : index
    %38 = vector.load %arg8[%c16, %c0_26] : memref<32x128xf32, #tpu.memory_space<vmem>>, vector<16x128xf32>
    %39 = arith.truncf %38 : vector<16x128xf32> to vector<16x128xbf16>
    %40 = vector.extract_strided_slice %8 {offsets = [128, 0], sizes = [128, 640], strides = [1, 1]} : vector<256x640xbf16> to vector<128x640xbf16>
    %cst_27 = arith.constant dense<0.000000e+00> : vector<16x640xf32>
    %41 = tpu.matmul %39, %40, %cst_27 {dimension_numbers = #tpu.dot_dimension_numbers<[1], [0], [0], [1], [0, 0, 1, 1], [], []>} : vector<16x128xbf16>, vector<128x640xbf16>, vector<16x640xf32> -> vector<16x640xf32>
    %42 = arith.addf %37, %41 : vector<16x640xf32>
    %43 = vector.extract_strided_slice %42 {offsets = [0, 0], sizes = [16, 256], strides = [1, 1]} : vector<16x640xf32> to vector<16x256xf32>
    %44 = vector.broadcast %9 : vector<1x256xf32> to vector<16x256xf32>
    %45 = arith.addf %43, %44 : vector<16x256xf32>
    %46 = arith.negf %45 : vector<16x256xf32>
    %47 = math.exp %46 : vector<16x256xf32>
    %cst_28 = arith.constant 1.000000e+00 : f32
    %48 = vector.broadcast %cst_28 : f32 to vector<16x256xf32>
    %49 = arith.addf %48, %47 : vector<16x256xf32>
    %50 = arith.divf %48, %49 : vector<16x256xf32>
    %51 = vector.extract_strided_slice %50 {offsets = [0, 0], sizes = [16, 128], strides = [1, 1]} : vector<16x256xf32> to vector<16x128xf32>
    %c0_29 = arith.constant 0 : index
    %c0_30 = arith.constant 0 : index
    %52 = vector.load %arg9[%c0_29, %c0_30] : memref<32x128xf32, #tpu.memory_space<vmem>>, vector<16x128xf32>
    %53 = arith.mulf %51, %52 : vector<16x128xf32>
    %54 = vector.extract_strided_slice %50 {offsets = [0, 128], sizes = [16, 128], strides = [1, 1]} : vector<16x256xf32> to vector<16x128xf32>
    %c16_31 = arith.constant 16 : index
    %c0_32 = arith.constant 0 : index
    %55 = vector.load %arg9[%c16_31, %c0_32] : memref<32x128xf32, #tpu.memory_space<vmem>>, vector<16x128xf32>
    %56 = arith.mulf %54, %55 : vector<16x128xf32>
    %57 = arith.addf %53, %56 : vector<16x128xf32>
    %58 = vector.extract_strided_slice %42 {offsets = [0, 256], sizes = [16, 384], strides = [1, 1]} : vector<16x640xf32> to vector<16x384xf32>
    %59 = arith.addf %33, %58 : vector<16x384xf32>
    %60 = vector.extract_strided_slice %59 {offsets = [0, 0], sizes = [16, 128], strides = [1, 1]} : vector<16x384xf32> to vector<16x128xf32>
    %61 = arith.negf %60 : vector<16x128xf32>
    %62 = math.exp %61 : vector<16x128xf32>
    %cst_33 = arith.constant 1.000000e+00 : f32
    %63 = vector.broadcast %cst_33 : f32 to vector<16x128xf32>
    %64 = arith.addf %63, %62 : vector<16x128xf32>
    %65 = arith.divf %63, %64 : vector<16x128xf32>
    %66 = vector.extract_strided_slice %59 {offsets = [0, 128], sizes = [16, 128], strides = [1, 1]} : vector<16x384xf32> to vector<16x128xf32>
    %67 = arith.negf %66 : vector<16x128xf32>
    %68 = math.exp %67 : vector<16x128xf32>
    %cst_34 = arith.constant 1.000000e+00 : f32
    %69 = vector.broadcast %cst_34 : f32 to vector<16x128xf32>
    %70 = arith.addf %69, %68 : vector<16x128xf32>
    %71 = arith.divf %69, %70 : vector<16x128xf32>
    %72 = vector.extract_strided_slice %59 {offsets = [0, 256], sizes = [16, 128], strides = [1, 1]} : vector<16x384xf32> to vector<16x128xf32>
    %73 = math.tanh %72 : vector<16x128xf32>
    %74 = arith.mulf %65, %73 : vector<16x128xf32>
    %75 = arith.addf %74, %57 : vector<16x128xf32>
    %76 = math.tanh %75 : vector<16x128xf32>
    %77 = arith.mulf %71, %76 : vector<16x128xf32>
    %c0_35 = arith.constant 0 : index
    %c8_36 = arith.constant 8 : index
    %c0_37 = arith.constant 0 : index
    %78 = vector.load %arg6[%c0_35, %c8_36, %c0_37] : memref<1x56x128xf32, #tpu.memory_space<vmem>>, vector<1x16x128xf32>
    %79 = vector.shape_cast %78 : vector<1x16x128xf32> to vector<16x128xf32>
    %80 = vector.shape_cast %77 : vector<16x128xf32> to vector<1x16x128xf32>
    tpu.vector_store %arg6[%c0_35, %c8_36, %c0_37], %80 {strides = array<i32>} : memref<1x56x128xf32, #tpu.memory_space<vmem>>, vector<1x16x128xf32>,
    %c0_38 = arith.constant 0 : index
    %c0_39 = arith.constant 0 : index
    %81 = vector.load %arg8[%c0_38, %c0_39] : memref<32x128xf32, #tpu.memory_space<vmem>>, vector<16x128xf32>
    tpu.vector_store %arg8[%c0_38, %c0_39], %77 {strides = array<i32>} : memref<32x128xf32, #tpu.memory_space<vmem>>, vector<16x128xf32>,
    %c0_40 = arith.constant 0 : index
    %c0_41 = arith.constant 0 : index
    %82 = vector.load %arg9[%c0_40, %c0_41] : memref<32x128xf32, #tpu.memory_space<vmem>>, vector<16x128xf32>
    tpu.vector_store %arg9[%c0_40, %c0_41], %75 {strides = array<i32>} : memref<32x128xf32, #tpu.memory_space<vmem>>, vector<16x128xf32>,
    %c0_42 = arith.constant 0 : index
    %c0_43 = arith.constant 0 : index
    %83 = vector.load %arg7[%c0_42, %c0_43] : memref<56x384xf32, #tpu.memory_space<vmem>>, vector<8x384xf32>
    %c0_44 = arith.constant 0 : index
    %c0_45 = arith.constant 0 : index
    %84 = vector.load %arg8[%c0_44, %c0_45] : memref<32x128xf32, #tpu.memory_space<vmem>>, vector<8x128xf32>
    %85 = arith.truncf %84 : vector<8x128xf32> to vector<8x128xbf16>
    %86 = vector.extract_strided_slice %8 {offsets = [0, 0], sizes = [128, 640], strides = [1, 1]} : vector<256x640xbf16> to vector<128x640xbf16>
    %cst_46 = arith.constant dense<0.000000e+00> : vector<8x640xf32>
    %87 = tpu.matmul %85, %86, %cst_46 {dimension_numbers = #tpu.dot_dimension_numbers<[1], [0], [0], [1], [0, 0, 1, 1], [], []>} : vector<8x128xbf16>, vector<128x640xbf16>, vector<8x640xf32> -> vector<8x640xf32>
    %c8_47 = arith.constant 8 : index
    %c0_48 = arith.constant 0 : index
    %88 = vector.load %arg8[%c8_47, %c0_48] : memref<32x128xf32, #tpu.memory_space<vmem>>, vector<8x128xf32>
    %89 = arith.truncf %88 : vector<8x128xf32> to vector<8x128xbf16>
    %90 = vector.extract_strided_slice %8 {offsets = [128, 0], sizes = [128, 640], strides = [1, 1]} : vector<256x640xbf16> to vector<128x640xbf16>
    %cst_49 = arith.constant dense<0.000000e+00> : vector<8x640xf32>
    %91 = tpu.matmul %89, %90, %cst_49 {dimension_numbers = #tpu.dot_dimension_numbers<[1], [0], [0], [1], [0, 0, 1, 1], [], []>} : vector<8x128xbf16>, vector<128x640xbf16>, vector<8x640xf32> -> vector<8x640xf32>
    %92 = arith.addf %87, %91 : vector<8x640xf32>
    %93 = vector.extract_strided_slice %92 {offsets = [0, 0], sizes = [8, 256], strides = [1, 1]} : vector<8x640xf32> to vector<8x256xf32>
    %94 = vector.broadcast %9 : vector<1x256xf32> to vector<8x256xf32>
    %95 = arith.addf %93, %94 : vector<8x256xf32>
    %96 = arith.negf %95 : vector<8x256xf32>
    %97 = math.exp %96 : vector<8x256xf32>
    %cst_50 = arith.constant 1.000000e+00 : f32
    %98 = vector.broadcast %cst_50 : f32 to vector<8x256xf32>
    %99 = arith.addf %98, %97 : vector<8x256xf32>
    %100 = arith.divf %98, %99 : vector<8x256xf32>
    %101 = vector.extract_strided_slice %100 {offsets = [0, 0], sizes = [8, 128], strides = [1, 1]} : vector<8x256xf32> to vector<8x128xf32>
    %c0_51 = arith.constant 0 : index
    %c0_52 = arith.constant 0 : index
    %102 = vector.load %arg9[%c0_51, %c0_52] : memref<32x128xf32, #tpu.memory_space<vmem>>, vector<8x128xf32>
    %103 = arith.mulf %101, %102 : vector<8x128xf32>
    %104 = vector.extract_strided_slice %100 {offsets = [0, 128], sizes = [8, 128], strides = [1, 1]} : vector<8x256xf32> to vector<8x128xf32>
    %c8_53 = arith.constant 8 : index
    %c0_54 = arith.constant 0 : index
    %105 = vector.load %arg9[%c8_53, %c0_54] : memref<32x128xf32, #tpu.memory_space<vmem>>, vector<8x128xf32>
    %106 = arith.mulf %104, %105 : vector<8x128xf32>
    %107 = arith.addf %103, %106 : vector<8x128xf32>
    %108 = vector.extract_strided_slice %92 {offsets = [0, 256], sizes = [8, 384], strides = [1, 1]} : vector<8x640xf32> to vector<8x384xf32>
    %109 = arith.addf %83, %108 : vector<8x384xf32>
    %110 = vector.extract_strided_slice %109 {offsets = [0, 0], sizes = [8, 128], strides = [1, 1]} : vector<8x384xf32> to vector<8x128xf32>
    %111 = arith.negf %110 : vector<8x128xf32>
    %112 = math.exp %111 : vector<8x128xf32>
    %cst_55 = arith.constant 1.000000e+00 : f32
    %113 = vector.broadcast %cst_55 : f32 to vector<8x128xf32>
    %114 = arith.addf %113, %112 : vector<8x128xf32>
    %115 = arith.divf %113, %114 : vector<8x128xf32>
    %116 = vector.extract_strided_slice %109 {offsets = [0, 128], sizes = [8, 128], strides = [1, 1]} : vector<8x384xf32> to vector<8x128xf32>
    %117 = arith.negf %116 : vector<8x128xf32>
    %118 = math.exp %117 : vector<8x128xf32>
    %cst_56 = arith.constant 1.000000e+00 : f32
    %119 = vector.broadcast %cst_56 : f32 to vector<8x128xf32>
    %120 = arith.addf %119, %118 : vector<8x128xf32>
    %121 = arith.divf %119, %120 : vector<8x128xf32>
    %122 = vector.extract_strided_slice %109 {offsets = [0, 256], sizes = [8, 128], strides = [1, 1]} : vector<8x384xf32> to vector<8x128xf32>
    %123 = math.tanh %122 : vector<8x128xf32>
    %124 = arith.mulf %115, %123 : vector<8x128xf32>
    %125 = arith.addf %124, %107 : vector<8x128xf32>
    %126 = math.tanh %125 : vector<8x128xf32>
    %127 = arith.mulf %121, %126 : vector<8x128xf32>
    %c0_57 = arith.constant 0 : index
    %c0_58 = arith.constant 0 : index
    %c0_59 = arith.constant 0 : index
    %128 = vector.load %arg6[%c0_57, %c0_58, %c0_59] : memref<1x56x128xf32, #tpu.memory_space<vmem>>, vector<1x8x128xf32>
    %129 = vector.shape_cast %128 : vector<1x8x128xf32> to vector<8x128xf32>
    %130 = vector.shape_cast %127 : vector<8x128xf32> to vector<1x8x128xf32>
    tpu.vector_store %arg6[%c0_57, %c0_58, %c0_59], %130 {strides = array<i32>} : memref<1x56x128xf32, #tpu.memory_space<vmem>>, vector<1x8x128xf32>,
    return
  }
  func.func @transform_0(%arg0: i32) -> (i32, i32, i32) {
    %c0_i32 = arith.constant 0 : i32
    %c0_i32_0 = arith.constant 0 : i32
    %c0_i32_1 = arith.constant 0 : i32
    return %arg0, %c0_i32, %c0_i32_0 : i32, i32, i32
  }
  func.func @transform_1(%arg0: i32) -> (i32, i32) {
    %c0_i32 = arith.constant 0 : i32
    %c0_i32_0 = arith.constant 0 : i32
    %c0_i32_1 = arith.constant 0 : i32
    return %c0_i32, %c0_i32_0 : i32, i32
  }
  func.func @transform_2(%arg0: i32) -> (i32, i32) {
    %c0_i32 = arith.constant 0 : i32
    %c0_i32_0 = arith.constant 0 : i32
    %c0_i32_1 = arith.constant 0 : i32
    return %c0_i32, %c0_i32_0 : i32, i32
  }
  func.func @transform_3(%arg0: i32) -> (i32, i32) {
    %c0_i32 = arith.constant 0 : i32
    %c0_i32_0 = arith.constant 0 : i32
    %c0_i32_1 = arith.constant 0 : i32
    return %c0_i32, %c0_i32_0 : i32, i32
  }
  func.func @transform_4(%arg0: i32) -> (i32, i32) {
    %c0_i32 = arith.constant 0 : i32
    %c0_i32_0 = arith.constant 0 : i32
    %c0_i32_1 = arith.constant 0 : i32
    return %c0_i32, %c0_i32_0 : i32, i32
  }
  func.func @transform_5(%arg0: i32) -> (i32, i32, i32) {
    %c0_i32 = arith.constant 0 : i32
    %c0_i32_0 = arith.constant 0 : i32
    %c0_i32_1 = arith.constant 0 : i32
    return %arg0, %c0_i32, %c0_i32_0 : i32, i32, i32
  }
}

</mosaic_0001>

<bundles_post_ra>
// kernel: tpu_custom_call.1
= control target key start
LH: loop header
LB: loop body
LE: loop exit
PB: predicated region body
PF: predicated region fallthrough
CT: control target
= control target key end

     0   :  { %10 = vsyncpa [#allocation6], 0  ;;  %s3499_s0 = inlined_call_operand.hbm [shape: bf16[2,56,128], index: 0, kind: input, shape index: {}]   ;;  %s3500_s1 = inlined_call_operand.hbm [shape: bf16[128,384], index: 1, kind: input, shape index: {}]   ;;  %s3501_s2 = inlined_call_operand.hbm [shape: bf16[256,640], index: 2, kind: input, shape index: {}]   ;;  %s3502_s3 = inlined_call_operand.vmem [shape: f32[1,256], index: 3, kind: input, shape index: {}]   ;;  %s3503_s4 = inlined_call_operand.vmem [shape: f32[1,384], index: 4, kind: input, shape index: {}]   ;;  %s3504_s5 = inlined_call_operand.hbm [shape: f32[2,56,128], index: 5, kind: output, shape index: {}]  }
   0x1   :  { %12 = vsyncpa [#allocation6 + $0x1], 0 }
   0x2   :  { %13 = vsyncpa [#allocation9], 0 }
   0x3   :  { %14 = vsyncpa [#allocation7], 0 }
   0x4   :  { %16 = vsyncpa [#allocation7 + $0x1], 0  ;;  %s2820_s18 = smov 0   ;;  %s2822_s19 = smov 0  }
   0x5   :  { %s2824_s20 = smov 0   ;;  %s2826_s21 = smov 0  }
   0x6 LB: > { %s2841_s22 = sadd.s32 4294967295, %s2773_s21   ;;  %s1994_s23 = sadd.s32 4294967294, %s2773_s21   ;;  %s2773_s21 = sphi %s2826_s21, %s3631_s21   ;;  %s2769_s20 = sphi %s2824_s20, %s3630_s20   ;;  %s2765_s19 = sphi %s2822_s19, %s3629_s19   ;;  %s2761_s18 = sphi %s2820_s18, %s3628_s18  }
   0x7   : > { %p42_p0 = scmp.ne.s32.totalorder %s2765_s19, %s2761_s18  ;;  %p3505_p1 = scmp.eq.s32.totalorder %s2841_s22, 0 }
   0x8   : > { %p156_p3 = scmp.eq.s32.totalorder %s1994_s23, 1  ;;  %p1995_p5 = scmp.ge.s32.totalorder %s2773_s21, 1 }
   0x9   : > { %p2850_p4 = por %p3505_p1, %p42_p0  ;;  %p163_p7 = scmp.lt.s32.totalorder %s2773_s21, 3 }
   0xa   : > { %p2855_p6 = por %p156_p3, %p42_p0  ;;  %s2775_s27 = smov [#allocation8]  }
   0xb   : > { %s3544_s24 = scalar_select %p2850_p4, 1, 0 }
   0xc   : > { %s3545_s25 = scalar_select %p2855_p6, 1, 0 }
   0xd   : > { %p2860_p8 = pnand %p1995_p5, %p163_p7  ;;  %s175_s28 = sshll.u32 %s2775_s27, 4  ;;  %s176_s28 = int_to_ptr.vmem [resolvable:$true] %s175_s28 }
   0xe   : > { %s2776_s30 = smov [#allocation10]   ;;  %s2636_s7 = scalar_lea.vmem %s176_s28, 3072 }
   0xf   : > { %s3546_s26 = scalar_select %p2860_p8, 1, 0 }
  0x10   : > { %p2303_p9 = pneg %p2860_p8  ;;  %s188_s6 = sshll.u32 %s2776_s30, 4  ;;  %s189_s6 = int_to_ptr.vmem [resolvable:$true] %s188_s6 }
  0x11   : > { %p2637_p13 = scmp.ne.s32.totalorder %s176_s28, %s2636_s7  ;;  %p2644_p5 = scmp.lt.s32.totalorder %s176_s28, %s176_s28 }
  0x12   : > { %p2869_p11 = pnand %p2303_p9, %p3505_p1  ;;  %p2645_p7 = scmp.lt.s32.totalorder %s2636_s7, %s2636_s7 }
  0x14   : > { %p2627_p12 = pneg %p2869_p11  ;;  %p2646_p10 = por %p2645_p7, %p2644_p5 }
  0x16   : > { %p2639_p0 = pnand %p2637_p13, %p2627_p12 }
  0x18   : > { %p2640_p3 = pneg %p2639_p0 }
  0x1a   : > { %p2647_p9 = pnand %p2646_p10, %p2640_p3 }
  0x1c   : > { %2650 = shalt.err (!%p2647_p9)
}
  0x1d   : > { %s2777_s8 = smov 192   ;;  %s2778_s9 = smov 12  }
  0x1e   : > { %2306 = dma.hbm_to_vmem [thread:$0]  (!%p2869_p11), %s3500_s1, 3072, %s176_s28, [#allocation9], %s2777_s8, %s2777_s8, %s2778_s9  }
  0x1f   : > { %s2662_s12 = scalar_lea.vmem %s189_s6, 10240  ;;  %p2670_p2 = scmp.lt.s32.totalorder %s189_s6, %s189_s6 }
  0x20   : > { %p2663_p1 = scmp.ne.s32.totalorder %s189_s6, %s2662_s12  ;;  %p2671_p6 = scmp.lt.s32.totalorder %s2662_s12, %s2662_s12 }
  0x22   : > { %p2665_p13 = pnand %p2663_p1, %p2627_p12  ;;  %p2672_p5 = por %p2671_p6, %p2670_p2 }
  0x24   : > { %p2666_p0 = pneg %p2665_p13 }
  0x26   : > { %p2673_p10 = pnand %p2672_p5, %p2666_p0 }
  0x28   : > { %2676 = shalt.err (!%p2673_p10)
}
  0x29   : > { %s2779_s13 = smov 320   ;;  %s2780_s14 = smov 20  }
  0x2a   : > { %2309 = dma.hbm_to_vmem [thread:$0]  (!%p2869_p11), %s3501_s2, 10240, %s189_s6, [#allocation9], %s2779_s13, %s2779_s13, %s2780_s14  }
  0x2b   : > { %s2892_s17 = sadd.s32 1, %s2773_s21   ;;  %s29_s27 = sadd.s32 1, %s2769_s20 }
  0x2c   : > { %s26_s23 = ssub.s32 %s2773_s21, %s2892_s17  ;;  %p36_p2 = scmp.ne.s32.totalorder %s2769_s20, %s2765_s19 }
  0x2d   : > { %p27_p1 = scmp.eq.s32.totalorder %s26_s23, 0  ;;  %p37_p6 = scmp.eq.s32.totalorder %s2773_s21, 0 }
  0x2e   : > { %p3548_p3 = scmp.eq.s32.totalorder %s2841_s22, 1  ;;  %p2320_p9 = scmp.lt.s32.totalorder %s2773_s21, 2 }
  0x2f   : > { %s2901_s28 = scalar_select %p27_p1, %s2769_s20, %s29_s27  }
  0x30   : > { %p38_p12 = por %p37_p6, %p36_p2  ;;  %p2905_p7 = por %p3548_p3, %p36_p2 }
  0x31   : > { %s208_s29 = sand.u32 1, %s2769_s20   ;;  %s2287_s6 = smul.u32 448, %s2773_s21 }
  0x32   : > { %s3549_s30 = scalar_select %p2905_p7, 1, 0 }
  0x33   : > { %s2286_s7 = smul.u32 28, %s208_s29  ;;  %p2912_p11 = pnand %p2320_p9, %p38_p12 }
  0x34   : > { %s2919_s11 = scalar_lea.hbm %s3499_s0, %s2287_s6  ;;  %s2923_s14 = scalar_lea.sflag [#allocation6], %s208_s29 }
  0x35   : > { %s212_s12 = scalar_lea.vmem [#allocation5], %s2286_s7  ;;  %s2677_s15 = scalar_lea.hbm %s2919_s11, 448 }
  0x36   : > { %s219_s13 = sshll.u32 %s212_s12, 4  ;;  %p2678_p13 = scmp.ne.s32.totalorder %s2919_s11, %s2677_s15  ;;  %s2921_s13 = int_to_ptr.vmem [resolvable:$true] %s219_s13 }
  0x37   : > { %p2679_p0 = pneg %p2912_p11  ;;  %s2682_s27 = scalar_lea.hbm %s3499_s0, 896 }
  0x38   : > { %p2683_p1 = scmp.lt.s32.totalorder %s2919_s11, %s3499_s0  ;;  %p2684_p2 = scmp.lt.s32.totalorder %s2682_s27, %s2677_s15 }
  0x39   : > { %p2680_p5 = pnand %p2679_p0, %p2678_p13 }
  0x3a   : > { %p2685_p6 = por %p2684_p2, %p2683_p1 }
  0x3b   : > { %p2681_p10 = pneg %p2680_p5 }
  0x3d   : > { %p2686_p12 = pnand %p2685_p6, %p2681_p10 }
  0x3f   : > { %2689 = shalt.err (!%p2686_p12)
}
  0x40   : > { %s2690_s29 = scalar_lea.vmem %s2921_s13, 448  ;;  %s2781_s7 = smov [#allocation5]  }
  0x41   : > { %p2691_p3 = scmp.ne.s32.totalorder %s2921_s13, %s2690_s29  ;;  %s2695_s10 = sshll.u32 %s2781_s7, 4  ;;  %s2696_s10 = int_to_ptr.vmem [resolvable:$false] %s2695_s10 }
  0x42   : > { %s2697_s12 = scalar_lea.vmem %s2696_s10, 896  ;;  %p2698_p5 = scmp.lt.s32.totalorder %s2921_s13, %s2696_s10 }
  0x43   : > { %p2693_p9 = pnand %p2691_p3, %p2679_p0  ;;  %p2699_p7 = scmp.lt.s32.totalorder %s2697_s12, %s2690_s29 }
  0x45   : > { %p2694_p13 = pneg %p2693_p9  ;;  %p2700_p4 = por %p2699_p7, %p2698_p5 }
  0x47   : > { %p2701_p8 = pnand %p2700_p4, %p2694_p13 }
  0x49   : > { %2704 = shalt.err (!%p2701_p8)
}
  0x4a   : > { %s2782_s15 = smov 64   ;;  %s2783_s16 = smov 4  }
  0x4b   : > { %2313 = dma.hbm_to_vmem [thread:$0]  (!%p2912_p11), %s2919_s11, 448, %s2921_s13, %s2923_s14, %s2782_s15, %s2782_s15, %s2783_s16  }
  0x4c   : > { %p3551_p0 = scmp.ne.s32.totalorder %s3546_s26, 0 }
  0x4e   : > { %231 = sbr.rel (%p3551_p0) target bundleno = 1041 (0x411), region = 40 }
  0x53   : > { %s2947_s23 = sand.u32 1, %s2765_s19   ;;  %p3552_p4 = scmp.ne.s32.totalorder %s3544_s24, 0 }
  0x54   : > { %s2288_s27 = smul.u32 28, %s2947_s23  ;;  %s234_s6 = scalar_lea.sflag [#allocation6], %s2947_s23 }
  0x56   : > { %s2951_s9 = scalar_lea.vmem [#allocation5], %s2288_s27 }
  0x57   : > { %2748 = dma.done.wait (%p3552_p4), %s234_s6, 448  }
  0x58   : > { %2750 = vsyncadd (%p3552_p4), %s234_s6, 4294966848  ;;  %p3553_p8 = scmp.eq.s32.totalorder %s2841_s22, 0 }
  0x5a   : > { %2752 = dma.done.wait (%p3553_p8), [#allocation9], 13312   ;;  %p3554_p7 = pmov %p3553_p8 }
  0x5b   : > { %v3511_v0 = vmov 0   ;;  %v2369_v1 = vld [vmem:[#allocation8 + $0xac] ss:$12 sps:$4 sm:$0xff]   ;;  %v2371_v2 = vld [vmem:[#allocation8 + $0xa8] ss:$12 sps:$4 sm:$0xff]   ;;  %v3513_v62 = vmov 0.0   ;;  %v314_v63 = vlaneseq }
  0x5c   : > { %2754 = vsyncadd (%p3554_p7), [#allocation9], 4294953984  ;;  %511 = vmatprep.mubr.bf16.mxu0 %v3511_v0  ;;  %479 = vmatprep.subr.bf16.mxu0 %v2369_v1  ;;  %v2372_v3 = vld [vmem:[#allocation8 + $0x94] ss:$12 sps:$4 sm:$0xff]   ;;  %v2374_v4 = vld [vmem:[#allocation8 + $0x90] ss:$12 sps:$4 sm:$0xff]  }
  0x5d   : > { %480 = vmatpush1.bf16.msra.mxu0 %v2371_v2  ;;  %v2375_v5 = vld [vmem:[#allocation8 + $0x7c] ss:$12 sps:$4 sm:$0xff]   ;;  %v2377_v6 = vld [vmem:[#allocation8 + $0x78] ss:$12 sps:$4 sm:$0xff]   ;;  %v2380_v9 = vld [vmem:[#allocation8 + $0x60] ss:$12 sps:$4 sm:$0xff]  }
  0x5e   : > { %481 = vmatprep.subr.bf16.mxu0 %v2372_v3  ;;  %v2378_v7 = vld [vmem:[#allocation8 + $0x64] ss:$12 sps:$4 sm:$0xff]   ;;  %v2381_v11 = vld [vmem:[#allocation8 + $0x4c] ss:$12 sps:$4 sm:$0xff]   ;;  %v2383_v12 = vld [vmem:[#allocation8 + $0x48] ss:$12 sps:$4 sm:$0xff]  }
  0x5f   : > { %v2387_v8 = vld [vmem:[#allocation8 + $0xb0] ss:$12 sps:$4 sm:$0xff]   ;;  %v2391_v10 = vld [vmem:[#allocation8 + $0x98] ss:$12 sps:$4 sm:$0xff]   ;;  %v2395_v13 = vld [vmem:[#allocation8 + $0x80] ss:$12 sps:$4 sm:$0xff]  }
  0x60   : > { %2182 = vmatprep.subr.bf16.mxu1 %v2387_v8  ;;  %v2384_v14 = vld [vmem:[#allocation8 + $0x34] ss:$12 sps:$4 sm:$0xff]   ;;  %v2396_v15 = vld [vmem:[%s2951_s9] sm:$0xff]   ;;  %v2386_v17 = vld [vmem:[#allocation8 + $0x30] ss:$12 sps:$4 sm:$0xff]   ;;  %v3071_v1 = vshrl.u32 %v314_v63, 7 }
  0x61   : > { %482 = vmatpush1.bf16.msra.mxu0 %v2374_v4  ;;  %2183 = vmatpush3.bf16.msra.mxu1 %v2387_v8  ;;  %v2397_v16 = vld [vmem:[#allocation8 + $0x68] ss:$12 sps:$4 sm:$0xff]   ;;  %v2398_v19 = vld [vmem:[#allocation8 + $0x50] ss:$12 sps:$4 sm:$0xff]   ;;  %v2390_v20 = vld [vmem:[#allocation8 + $0x18] ss:$12 sps:$4 sm:$0xff]  }
  0x62   : > { %483 = vmatprep.subr.bf16.mxu0 %v2375_v5  ;;  %2184 = vmatprep.subr.bf16.mxu1 %v2391_v10  ;;  %v2388_v18 = vld [vmem:[#allocation8 + $0x1c] ss:$12 sps:$4 sm:$0xff]   ;;  %v2392_v21 = vld [vmem:[#allocation8 + $0x4] ss:$12 sps:$4 sm:$0xff]   ;;  %v2394_v23 = vld [vmem:[#allocation8] ss:$12 sps:$4 sm:$0xff]  }
  0x63   : > { %2198 = vmatprep.mubr.bf16.mxu1 %v2396_v15  ;;  %v2400_v22 = vld [vmem:[#allocation8 + $0x38] ss:$12 sps:$4 sm:$0xff]   ;;  %v2401_v24 = vld [vmem:[#allocation8 + $0x20] ss:$12 sps:$4 sm:$0xff]   ;;  %v2403_v25 = vld [vmem:[#allocation8 + $0x8] ss:$12 sps:$4 sm:$0xff]  }
  0x64   : > { %v2399_v26 = vld [vmem:[%s2951_s9 + $0x8] sm:$0xff]   ;;  %v2402_v27 = vld [vmem:[%s2951_s9 + $0x10] sm:$0xff]   ;;  %v2404_v28 = vld [vmem:[%s2951_s9 + $0x18] ss:$0 sps:$4 sm:$0xff]   ;;  %v3509_v2 = vsub.s32 0, %v3071_v1  ;;  %v3510_v4 = vsub.s32 1, %v3071_v1 }
  0x65   : > { %484 = vmatpush1.bf16.msra.mxu0 %v2377_v6  ;;  %2185 = vmatpush3.bf16.msra.mxu1 %v2391_v10  ;;  %v2971_v29 = vld [vmem:[#allocation10 + $0x25c] ss:$20 sps:$4 sm:$0xff]   ;;  %v2973_v30 = vld [vmem:[#allocation10 + $0x264] ss:$20 sps:$4 sm:$0xff]   ;;  %v2977_v32 = vld [vmem:[#allocation10 + $0x260] ss:$20 sps:$4 sm:$0xff]  }
  0x66   : > { %485 = vmatprep.subr.bf16.mxu0 %v2378_v7  ;;  %2186 = vmatprep.subr.bf16.mxu1 %v2395_v13  ;;  %v2975_v31 = vld [vmem:[#allocation10 + $0x258] ss:$20 sps:$4 sm:$0xff]   ;;  %v2983_v33 = vld [vmem:[#allocation10 + $0x234] ss:$20 sps:$4 sm:$0xff]   ;;  %v2985_v34 = vld [vmem:[#allocation10 + $0x23c] ss:$20 sps:$4 sm:$0xff]  }
  0x67   : > { %v2987_v35 = vld [vmem:[#allocation10 + $0x230] ss:$20 sps:$4 sm:$0xff]   ;;  %v2989_v36 = vld [vmem:[#allocation10 + $0x238] ss:$20 sps:$4 sm:$0xff]   ;;  %v2997_v38 = vld [vmem:[#allocation10 + $0x214] ss:$20 sps:$4 sm:$0xff]  }
  0x68   : > { %v2995_v37 = vld [vmem:[#allocation10 + $0x20c] ss:$20 sps:$4 sm:$0xff]   ;;  %v2999_v39 = vld [vmem:[#allocation10 + $0x208] ss:$20 sps:$4 sm:$0xff]   ;;  %v3001_v40 = vld [vmem:[#allocation10 + $0x210] ss:$20 sps:$4 sm:$0xff]  }
  0x69   : > { %486 = vmatpush1.bf16.msra.mxu0 %v2380_v9  ;;  %2187 = vmatpush3.bf16.msra.mxu1 %v2395_v13  ;;  %v3007_v41 = vld [vmem:[#allocation10 + $0x1e4] ss:$20 sps:$4 sm:$0xff]   ;;  %v3009_v42 = vld [vmem:[#allocation10 + $0x1ec] ss:$20 sps:$4 sm:$0xff]   ;;  %v3013_v44 = vld [vmem:[#allocation10 + $0x1e8] ss:$20 sps:$4 sm:$0xff]  }
  0x6a   : > { %487 = vmatprep.subr.bf16.mxu0 %v2381_v11  ;;  %2188 = vmatprep.subr.bf16.mxu1 %v2397_v16  ;;  %v3011_v43 = vld [vmem:[#allocation10 + $0x1e0] ss:$20 sps:$4 sm:$0xff]   ;;  %v3019_v45 = vld [vmem:[#allocation10 + $0x1bc] ss:$20 sps:$4 sm:$0xff]   ;;  %v3021_v46 = vld [vmem:[#allocation10 + $0x1c4] ss:$20 sps:$4 sm:$0xff]  }
  0x6b   : > { %v3023_v47 = vld [vmem:[#allocation10 + $0x1b8] ss:$20 sps:$4 sm:$0xff]   ;;  %v3025_v48 = vld [vmem:[#allocation10 + $0x1c0] ss:$20 sps:$4 sm:$0xff]   ;;  %v3031_v50 = vld [vmem:[#allocation10 + $0x19c] ss:$20 sps:$4 sm:$0xff]  }
  0x6c   : > { %v3029_v49 = vld [vmem:[#allocation10 + $0x194] ss:$20 sps:$4 sm:$0xff]   ;;  %v3035_v51 = vld [vmem:[#allocation10 + $0x190] ss:$20 sps:$4 sm:$0xff]   ;;  %v3037_v52 = vld [vmem:[#allocation10 + $0x198] ss:$20 sps:$4 sm:$0xff]  }
  0x6d   : > { %488 = vmatpush1.bf16.msra.mxu0 %v2383_v12  ;;  %2189 = vmatpush3.bf16.msra.mxu1 %v2397_v16  ;;  %v3041_v53 = vld [vmem:[#allocation10 + $0x16c] ss:$20 sps:$4 sm:$0xff]   ;;  %v3043_v54 = vld [vmem:[#allocation10 + $0x174] ss:$20 sps:$4 sm:$0xff]   ;;  %v3049_v56 = vld [vmem:[#allocation10 + $0x170] ss:$20 sps:$4 sm:$0xff]  }
  0x6e   : > { %489 = vmatprep.subr.bf16.mxu0 %v2384_v14  ;;  %2190 = vmatprep.subr.bf16.mxu1 %v2398_v19  ;;  %v3047_v55 = vld [vmem:[#allocation10 + $0x168] ss:$20 sps:$4 sm:$0xff]   ;;  %v3053_v57 = vld [vmem:[#allocation10 + $0x144] ss:$20 sps:$4 sm:$0xff]   ;;  %v3055_v58 = vld [vmem:[#allocation10 + $0x14c] ss:$20 sps:$4 sm:$0xff]  }
  0x6f   : > { %v3059_v59 = vld [vmem:[#allocation10 + $0x140] ss:$20 sps:$4 sm:$0xff]   ;;  %v3061_v60 = vld [vmem:[#allocation10 + $0x148] ss:$20 sps:$4 sm:$0xff]   ;;  %v324_v9 = vsub.s32 2, %v3071_v1  ;;  %s2289_s8 = smul.u32 56, %s2947_s23 }
  0x70   : > { %v3065_v61 = vld [vmem:[#allocation10 + $0x11c] ss:$20 sps:$4 sm:$0xff]   ;;  %v312_v3 = vld [vmem:[%s3503_s4] sm:$0x7]  ;;  %vm2786_vm0 = vmmov 0   ;;  %s2290_s29 = smul.u32 896, %s2841_s22 }
  0x71   : > { %490 = vmatpush1.bf16.msra.mxu0 %v2386_v17  ;;  %2191 = vmatpush3.bf16.msra.mxu1 %v2398_v19  ;;  %v317_v5 = vrot.slane %v312_v3, %v3509_v2  ;;  %v321_v6 = vrot.slane %v312_v3, %v3510_v4  ;;  %v3089_v14 = vrot.slane %v312_v3, %v324_v9  ;;  %s3125_s11 = scalar_lea.vmem [#allocation11], %s2289_s8  ;;  %s1889_s16 = scalar_lea.sflag [#allocation7], %s2947_s23 }
  0x72   : > { %491 = vmatprep.subr.bf16.mxu0 %v2388_v18  ;;  %2192 = vmatprep.subr.bf16.mxu1 %v2400_v22  ;;  %s1902_s7 = sshll.u32 %s3125_s11, 4  ;;  %s3453_s15 = scalar_lea.hbm %s3504_s5, %s2290_s29  ;;  %s3455_s7 = int_to_ptr.vmem [resolvable:$true] %s1902_s7 }
  0x73   : > { %s2705_s27 = scalar_lea.vmem %s3455_s7, 896  ;;  %p3625_p10 = scmp.ne.s32.totalorder %s3549_s30, 0 }
  0x74   : > { %p2706_p11 = scmp.ne.s32.totalorder %s3455_s7, %s2705_s27  ;;  %s2787_s22 = smov [#allocation11]  }
  0x75   : > { %492 = vmatpush1.bf16.msra.mxu0 %v2390_v20  ;;  %2193 = vmatpush3.bf16.msra.mxu1 %v2400_v22  ;;  %s2709_s6 = sshll.u32 %s2787_s22, 4  ;;  %s2710_s6 = int_to_ptr.vmem [resolvable:$false] %s2709_s6 }
  0x76   : > { %493 = vmatprep.subr.bf16.mxu0 %v2392_v21  ;;  %2194 = vmatprep.subr.bf16.mxu1 %v2401_v24  ;;  %p2707_p1 = pnand %p2706_p11, %p3625_p10  ;;  %s2711_s9 = scalar_lea.vmem %s2710_s6, 1792 }
  0x77   : > { %p2712_p6 = scmp.lt.s32.totalorder %s3455_s7, %s2710_s6  ;;  %p2713_p12 = scmp.lt.s32.totalorder %s2711_s9, %s2705_s27 }
  0x78   : > { %p2708_p2 = pneg %p2707_p1 }
  0x79   : > { %494 = vmatpush1.bf16.msra.mxu0 %v2394_v23  ;;  %2195 = vmatpush3.bf16.msra.mxu1 %v2401_v24  ;;  %p2714_p3 = por %p2713_p12, %p2712_p6 }
  0x7a   : > { %2196 = vmatprep.subr.bf16.mxu1 %v2403_v25  ;;  %1040 = vmatprep.subr.bf16.mxu0 %v2971_v29 }
  0x7b   : > { %p2715_p9 = pnand %p2714_p3, %p2708_p2 }
  0x7c   : > { %512 = vmatmul.mubr.bf16.vlgmr.msra.gmra.mxu0 %v2396_v15 }
  0x7d   : > { %521 = vmatprep.mubr.bf16.mxu0 %v3511_v0  ;;  %2197 = vmatpush3.bf16.msra.mxu1 %v2403_v25 }
  0x7e   : > { %1083 = vmatprep.subr.bf16.mxu1 %v2973_v30  ;;  %1041 = vmatpush1.bf16.msra.mxu0 %v2975_v31 }
  0x7f   : > { %1042 = vmatprep.subr.bf16.mxu0 %v2983_v33 }
  0x80   : > { %2199 = vmatmul.mubr.bf16.vlgmr.msra.gmra.mxu1 %v2399_v26 }
  0x81   : > { %2202 = vmatprep.mubr.bf16.mxu1 %v2402_v27  ;;  %1084 = vmatpush1.bf16.msra.mxu1 %v2977_v32 }
  0x82   : > { %1085 = vmatprep.subr.bf16.mxu1 %v2985_v34  ;;  %1043 = vmatpush1.bf16.msra.mxu0 %v2987_v35 }
  0x83   : > { %1044 = vmatprep.subr.bf16.mxu0 %v2995_v37 }
  0x84   : > { %522 = vmatmul.mubr.bf16.gmra.mxu0 %v2399_v26 }
  0x85   : > { %531 = vmatprep.mubr.bf16.mxu0 %v3511_v0  ;;  %1086 = vmatpush1.bf16.msra.mxu1 %v2989_v36 }
  0x86   : > { %1087 = vmatprep.subr.bf16.mxu1 %v2997_v38  ;;  %1045 = vmatpush1.bf16.msra.mxu0 %v2999_v39 }
  0x87   : > { %1046 = vmatprep.subr.bf16.mxu0 %v3007_v41 }
  0x88   : > { %2203 = vmatmul.mubr.bf16.gmra.mxu1 %v2404_v28 }
  0x89   : > { %1115 = vmatprep.mubr.bf16.mxu1 %v3511_v0  ;;  %1088 = vmatpush1.bf16.msra.mxu1 %v3001_v40 }
  0x8a   : > { %1089 = vmatprep.subr.bf16.mxu1 %v3009_v42  ;;  %1047 = vmatpush1.bf16.msra.mxu0 %v3011_v43 }
  0x8b   : > { %1048 = vmatprep.subr.bf16.mxu0 %v3019_v45 }
  0x8c   : > { %532 = vmatmul.mubr.bf16.gmra.mxu0 %v2402_v27 }
  0x8d   : > { %541 = vmatprep.mubr.bf16.mxu0 %v3511_v0  ;;  %1090 = vmatpush1.bf16.msra.mxu1 %v3013_v44 }
  0x8e   : > { %1091 = vmatprep.subr.bf16.mxu1 %v3021_v46  ;;  %1049 = vmatpush1.bf16.msra.mxu0 %v3023_v47 }
  0x8f   : > { %1050 = vmatprep.subr.bf16.mxu0 %v3029_v49 }
  0x91   : > { %1092 = vmatpush1.bf16.msra.mxu1 %v3025_v48 }
  0x92   : > { %1093 = vmatprep.subr.bf16.mxu1 %v3031_v50  ;;  %1051 = vmatpush1.bf16.msra.mxu0 %v3035_v51 }
  0x93   : > { %1052 = vmatprep.subr.bf16.mxu0 %v3041_v53 }
  0x94   : > { %542 = vmatmul.mubr.bf16.gmra.mxu0 %v2404_v28 }
  0x95   : > { %1072 = vmatprep.mubr.bf16.mxu0 %v3511_v0  ;;  %1094 = vmatpush1.bf16.msra.mxu1 %v3037_v52 }
  0x96   : > { %1095 = vmatprep.subr.bf16.mxu1 %v3043_v54  ;;  %1053 = vmatpush1.bf16.msra.mxu0 %v3047_v55 }
  0x97   : > { %1054 = vmatprep.subr.bf16.mxu0 %v3053_v57 }
  0x99   : > { %1096 = vmatpush1.bf16.msra.mxu1 %v3049_v56 }
  0x9a   : > { %1097 = vmatprep.subr.bf16.mxu1 %v3055_v58  ;;  %1055 = vmatpush1.bf16.msra.mxu0 %v3059_v59 }
  0x9b   : > { %2206 = vmatprep.subr.bf16.mxu0 %v3513_v62 }
  0x9d   : > { %1098 = vmatpush1.bf16.msra.mxu1 %v3061_v60 }
  0x9e   : > { %1375 = vmatprep.subr.bf16.mxu1 %v3065_v61 }
 0x13c   : > { %v513_v7 = vpop.f32.mrf.mxu0 }
 0x13d   : > { %v3082_v8 = vadd.f32 %v513_v7, %v317_v5 }
 0x13e   : > { %v515_v10 = vpop.f32.mrf.mxu0 }
 0x13f   : > { %3555 = vst [vmem:[#allocation15_spill] sm:$0xff] %v3082_v8  ;;  %v3085_v11 = vadd.f32 %v515_v10, %v321_v6 }
 0x140   : > { %v517_v12 = vpop.f32.mrf.mxu0  ;;  %v2200_v18 = vpop.f32.mrf.mxu1 }
 0x141   : > { %3556 = vst [vmem:[#allocation16_spill] sm:$0xff] %v3085_v11  ;;  %v3087_v13 = vadd.f32 %v517_v12, %v317_v5  ;;  %v3096_v20 = vadd.f32 %v2200_v18, %v3089_v14 }
 0x142   : > { %v519_v15 = vpop.f32.mrf.mxu0  ;;  %v584_v22 = vpop.f32.mrf.mxu1 }
 0x143   : > { %v3091_v16 = vadd.f32 %v519_v15, %v321_v6  ;;  %3557 = vst [vmem:[#allocation17_spill] sm:$0xff] %v3096_v20  ;;  %v3101_v24 = vadd.f32 %v584_v22, %v3089_v14 }
 0x144   : > { %v523_v17 = vpop.f32.mrf.mxu0  ;;  %v2201_v26 = vpop.f32.mrf.mxu1 }
 0x145   : > { %v3093_v19 = vadd.f32 %v523_v17, %v317_v5  ;;  %3558 = vst [vmem:[#allocation18_spill] sm:$0xff] %v3101_v24 }
 0x146   : > { %v525_v21 = vpop.f32.mrf.mxu0  ;;  %v587_v63 = vpop.f32.mrf.mxu1 }
 0x147   : > { %v3098_v23 = vadd.f32 %v525_v21, %v321_v6  ;;  %v3104_v7 = vadd.f32 %v587_v63, %v3089_v14 }
 0x148   : > { %v527_v25 = vpop.f32.mrf.mxu0  ;;  %v2204_v10 = vpop.f32.mrf.mxu1 }
 0x149   : > { %v528_v27 = vadd.f32 %v527_v25, %v317_v5 }
 0x14a   : > { %v529_v28 = vpop.f32.mrf.mxu0  ;;  %v600_v17 = vpop.f32.mrf.mxu1 }
 0x14b   : > { %v2031_v3 = vmul.f32 -1.442695, %v528_v27  ;;  %v530_v21 = vadd.f32 %v529_v28, %v321_v6 }
 0x14c   : > { %v533_v9 = vpop.f32.mrf.mxu0  ;;  %v2205_v22 = vpop.f32.mrf.mxu1 }
 0x14d   : > { %2517 = vpow2.f32 %v2031_v3  ;;  %v534_v12 = vadd.f32 %v533_v9, %v317_v5  ;;  %v2035_v62 = vmul.f32 -1.442695, %v530_v21  ;;  %v596_v3 = vadd.f32 %v2201_v26, %v3089_v14 }
 0x14e   : > { %v535_v15 = vpop.f32.mrf.mxu0  ;;  %v603_v21 = vpop.f32.mrf.mxu1  ;;  %v609_v26 = vadd.f32 %v2204_v10, %v3089_v14 }
 0x14f   : > { %v2032_v18 = vmul.f32 -1.442695, %v534_v12  ;;  %v536_v24 = vadd.f32 %v535_v15, %v321_v6 }
 0x150   : > { %v537_v2 = vpop.f32.mrf.mxu0 }
 0x151   : > { %2519 = vpow2.f32 %v2032_v18  ;;  %v538_v4 = vadd.f32 %v537_v2, %v317_v5  ;;  %v2036_v9 = vmul.f32 -1.442695, %v536_v24  ;;  %v601_v2 = vadd.f32 %v600_v17, %v3089_v14 }
 0x152   : > { %v539_v0 = vpop.f32.mrf.mxu0 }
 0x153   : > { %v2033_v25 = vmul.f32 -1.442695, %v538_v4  ;;  %v540_v20 = vadd.f32 %v539_v0, %v321_v6 }
 0x154   : > { %v543_v27 = vpop.f32.mrf.mxu0 }
 0x155   : > { %2521 = vpow2.f32 %v2033_v25  ;;  %v544_v63 = vadd.f32 %v543_v27, %v317_v5  ;;  %v2037_v4 = vmul.f32 -1.442695, %v540_v20 }
 0x156   : > { %v545_v11 = vpop.f32.mrf.mxu0  ;;  %2523 = vpow2.f32 %v2035_v62  ;;  %v604_v62 = vadd.f32 %v603_v21, %v3089_v14 }
 0x157   : > { %v2034_v8 = vmul.f32 -1.442695, %v544_v63  ;;  %v546_v15 = vadd.f32 %v545_v11, %v321_v6 }
 0x158   : > { %v547_v12 = vpop.f32.mrf.mxu0 }
 0x159   : > { %2525 = vpow2.f32 %v2034_v8  ;;  %v2038_v0 = vmul.f32 -1.442695, %v546_v15 }
 0x15a   : > { %v2518_v28 = vpop.eup %2517  ;;  %v548_v22 = vpop.f32.mrf.mxu0  ;;  %2527 = vtanh.f32 %v596_v3 }
 0x15b   : > { %v756_v18 = vadd.f32 1.0, %v2518_v28  ;;  %2529 = vpow2.f32 %v2036_v9 }
 0x15d   : > { %2531 = vrcp.f32 %v756_v18 }
 0x15e   : > { %v2520_v5 = vpop.eup %2519  ;;  %2533 = vtanh.f32 %v601_v2 }
 0x15f   : > { %v757_v25 = vadd.f32 1.0, %v2520_v5  ;;  %2535 = vpow2.f32 %v2037_v4 }
 0x161   : > { %2537 = vrcp.f32 %v757_v25 }
 0x162   : > { %v2522_v8 = vpop.eup %2521  ;;  %2539 = vtanh.f32 %v604_v62 }
 0x163   : > { %v758_v24 = vadd.f32 1.0, %v2522_v8  ;;  %2541 = vpow2.f32 %v2038_v0  ;;  %v2524_v17 = vpop.eup %2523 }
 0x164   : > { %v780_v27 = vadd.f32 1.0, %v2524_v17 }
 0x165   : > { %2543 = vrcp.f32 %v758_v24 }
 0x166   : > { %v2526_v20 = vpop.eup %2525  ;;  %2545 = vtanh.f32 %v609_v26 }
 0x167   : > { %v759_v6 = vadd.f32 1.0, %v2526_v20  ;;  %v2528_v11 = vpop.eup %2527 }
 0x168   : > { %v2530_v63 = vpop.eup %2529 }
 0x169   : > { %2547 = vrcp.f32 %v759_v6  ;;  %v781_v28 = vadd.f32 1.0, %v2530_v63 }
 0x16a   : > { %v2532_v3 = vpop.eup %2531  ;;  %2549 = vrcp.f32 %v780_v27 }
 0x16b   : > { %v3110_v9 = vmul.f32 %v2532_v3, %v2528_v11  ;;  %v2534_v12 = vpop.eup %2533 }
 0x16c   : > { %v2536_v22 = vpop.eup %2535 }
 0x16d   : > { %2551 = vtanh.f32 %v3110_v9  ;;  %v782_v2 = vadd.f32 1.0, %v2536_v22  ;;  %v3134_v22 = vld [vmem:[#allocation10 + $0x118] ss:$20 sps:$4 sm:$0xff]  }
 0x16e   : > { %v2538_v14 = vpop.eup %2537  ;;  %2553 = vrcp.f32 %v781_v28 }
 0x16f   : > { %v3113_v10 = vmul.f32 %v2538_v14, %v2534_v12  ;;  %v2540_v18 = vpop.eup %2539  ;;  %v3136_v14 = vld [vmem:[#allocation10 + $0x268] ss:$20 sps:$4 sm:$0xff]  }
 0x170   : > { %v2542_v4 = vpop.eup %2541 }
 0x171   : > { %2555 = vtanh.f32 %v3113_v10  ;;  %v783_v5 = vadd.f32 1.0, %v2542_v4  ;;  %v3147_v4 = vld [vmem:[#allocation10 + $0xf0] ss:$20 sps:$4 sm:$0xff]  }
 0x172   : > { %v2544_v15 = vpop.eup %2543  ;;  %2557 = vrcp.f32 %v782_v2  ;;  %v3141_v2 = vld [vmem:[#allocation10 + $0xf4] ss:$20 sps:$4 sm:$0xff]  }
 0x173   : > { %v3116_v21 = vmul.f32 %v2544_v15, %v2540_v18  ;;  %v2546_v25 = vpop.eup %2545  ;;  %v3149_v15 = vld [vmem:[#allocation10 + $0x240] ss:$20 sps:$4 sm:$0xff]  }
 0x175   : > { %2559 = vtanh.f32 %v3116_v21 }
 0x176   : > { %v2548_v62 = vpop.eup %2547  ;;  %2561 = vrcp.f32 %v783_v5  ;;  %v3559_v5 = vmov 0.0  }
 0x177   : > { %v3120_v0 = vmul.f32 %v2548_v62, %v2546_v25  ;;  %v2550_v8 = vpop.eup %2549  ;;  %v3153_v25 = vld [vmem:[#allocation10 + $0xcc] ss:$20 sps:$4 sm:$0xff]   ;;  %v3560_v62 = vmov 0  }
 0x179   : > { %2563 = vtanh.f32 %v3120_v0 }
 0x17a   : > { %v2552_v24 = vpop.eup %2551 }
 0x17b   : > { %v3123_v26 = vmul.f32 %v2552_v24, %v2550_v8  ;;  %v2554_v17 = vpop.eup %2553  ;;  %v3160_v8 = vld [vmem:[#allocation10 + $0xc8] ss:$20 sps:$4 sm:$0xff]   ;;  %v3162_v24 = vld [vmem:[#allocation10 + $0x218] ss:$20 sps:$4 sm:$0xff]  }
 0x17d   : > { %808 = vst [vmem:[%s3125_s11 + $0x18] sm:$0xff] %v3123_v26 }
 0x17e   : > { %v2556_v20 = vpop.eup %2555 }
 0x17f   : > { %v3129_v6 = vmul.f32 %v2556_v20, %v2554_v17  ;;  %v2558_v11 = vpop.eup %2557  ;;  %v3166_v17 = vld [vmem:[#allocation10 + $0xa4] ss:$20 sps:$4 sm:$0xff]   ;;  %v3170_v20 = vld [vmem:[#allocation10 + $0xa0] ss:$20 sps:$4 sm:$0xff]  }
 0x180   : > { %3561 = vst [vmem:[#allocation19_spill] sm:$0xff] %v3166_v17  ;;  %3562 = vst [vmem:[#allocation20_spill] sm:$0xff] %v3170_v20 }
 0x181   : > { %809 = vst [vmem:[%s3125_s11 + $0x20] sm:$0xff] %v3129_v6 }
 0x182   : > { %v2560_v27 = vpop.eup %2559 }
 0x183   : > { %v806_v63 = vmul.f32 %v2560_v27, %v2558_v11  ;;  %v2562_v3 = vpop.eup %2561  ;;  %v3172_v11 = vld [vmem:[#allocation10 + $0x1f0] ss:$20 sps:$4 sm:$0xff]  }
 0x184   : > { %3563 = vst [vmem:[#allocation21_spill] sm:$0xff] %v3172_v11  ;;  %v3176_v27 = vld [vmem:[#allocation10 + $0x7c] ss:$20 sps:$4 sm:$0xff]  }
 0x185   : > { %810 = vst [vmem:[%s3125_s11 + $0x28] sm:$0xff] %v806_v63  ;;  %3564 = vst [vmem:[#allocation22_spill] sm:$0xff] %v3176_v27 }
 0x186   : > { %v2564_v12 = vpop.eup %2563 }
 0x187   : > { %v807_v28 = vmul.f32 %v2564_v12, %v2562_v3  ;;  %v3182_v3 = vld [vmem:[#allocation10 + $0x1c8] ss:$20 sps:$4 sm:$0xff]  }
 0x188   : > { %3566 = vst [vmem:[#allocation24_spill] sm:$0xff] %v3182_v3  ;;  %v3186_v12 = vld [vmem:[#allocation10 + $0x54] ss:$20 sps:$4 sm:$0xff]  }
 0x189   : > { %811 = vst [vmem:[%s3125_s11 + $0x30] sm:$0xff] %v807_v28  ;;  %v3139_v18 = vpack.c.bf16 %v807_v28, %v806_v63  ;;  %v3180_v63 = vld [vmem:[#allocation10 + $0x78] ss:$20 sps:$4 sm:$0xff]   ;;  %3567 = vst [vmem:[#allocation25_spill] sm:$0xff] %v3186_v12  ;;  %v3190_v28 = vld [vmem:[#allocation10 + $0x50] ss:$20 sps:$4 sm:$0xff]  }
 0x18a   : > { %3565 = vst [vmem:[#allocation23_spill] sm:$0xff] %v3180_v63  ;;  %3568 = vst [vmem:[#allocation26_spill] sm:$0xff] %v3190_v28 }
 0x18b   : > { %1073 = vmatmul.mubr.bf16.vlgmr.msra.gmra.mxu0 %v3139_v18  ;;  %1116 = vmatmul.mubr.bf16.vlgmr.msra.gmra.mxu1 %v3139_v18 }
 0x18c   : > { %2207 = vmatpush3.bf16.msra.mxu0 %v3136_v14  ;;  %1376 = vmatpush1.bf16.msra.mxu1 %v3134_v22 }
 0x18d   : > { %2208 = vmatprep.subr.bf16.mxu0 %v3559_v5  ;;  %1377 = vmatprep.subr.bf16.mxu1 %v3141_v2 }
 0x18e   : > { %2222 = vmatprep.mubr.msk.bf16.mxu0 %vm2786_vm0, %v3559_v5  ;;  %1407 = vmatprep.mubr.bf16.mxu1 %v3560_v62 }
 0x190   : > { %2209 = vmatpush3.bf16.msra.mxu0 %v3149_v15  ;;  %1378 = vmatpush1.bf16.msra.mxu1 %v3147_v4 }
 0x191   : > { %2210 = vmatprep.subr.bf16.mxu0 %v3559_v5  ;;  %1379 = vmatprep.subr.bf16.mxu1 %v3153_v25 }
 0x194   : > { %2211 = vmatpush3.bf16.msra.mxu0 %v3162_v24  ;;  %1380 = vmatpush1.bf16.msra.mxu1 %v3160_v8 }
 0x195   : > { %2212 = vmatprep.subr.bf16.mxu0 %v3559_v5  ;;  %1381 = vmatprep.subr.bf16.mxu1 %v3166_v17  ;;  %v3192_v17 = vld [vmem:[#allocation10 + $0x1a0] ss:$20 sps:$4 sm:$0xff]  }
 0x196   : > { %3569 = vst [vmem:[#allocation27_spill] sm:$0xff] %v3192_v17 }
 0x198   : > { %2213 = vmatpush3.bf16.msra.mxu0 %v3172_v11  ;;  %1382 = vmatpush1.bf16.msra.mxu1 %v3170_v20  ;;  %v3196_v20 = vld [vmem:[#allocation10 + $0x2c] ss:$20 sps:$4 sm:$0xff]  }
 0x199   : > { %2214 = vmatprep.subr.bf16.mxu0 %v3559_v5  ;;  %1383 = vmatprep.subr.bf16.mxu1 %v3176_v27  ;;  %3570 = vst [vmem:[#allocation28_spill] sm:$0xff] %v3196_v20  ;;  %v3200_v27 = vld [vmem:[#allocation10 + $0x28] ss:$20 sps:$4 sm:$0xff]   ;;  %v3202_v11 = vld [vmem:[#allocation10 + $0x178] ss:$20 sps:$4 sm:$0xff]  }
 0x19a   : > { %3571 = vst [vmem:[#allocation29_spill] sm:$0xff] %v3200_v27  ;;  %3572 = vst [vmem:[#allocation30_spill] sm:$0xff] %v3202_v11 }
 0x19c   : > { %2215 = vmatpush3.bf16.msra.mxu0 %v3182_v3  ;;  %1384 = vmatpush1.bf16.msra.mxu1 %v3180_v63  ;;  %v3206_v63 = vld [vmem:[#allocation10 + $0x4] ss:$20 sps:$4 sm:$0xff]  }
 0x19d   : > { %2216 = vmatprep.subr.bf16.mxu0 %v3559_v5  ;;  %1385 = vmatprep.subr.bf16.mxu1 %v3186_v12  ;;  %v3210_v12 = vld [vmem:[#allocation10] ss:$20 sps:$4 sm:$0xff]   ;;  %v3212_v3 = vld [vmem:[#allocation10 + $0x150] ss:$20 sps:$4 sm:$0xff]  }
 0x19e   : > { %3573 = vst [vmem:[#allocation31_spill] sm:$0xff] %v3210_v12  ;;  %3574 = vst [vmem:[#allocation32_spill] sm:$0xff] %v3212_v3 }
 0x1a0   : > { %2217 = vmatpush3.bf16.msra.mxu0 %v3192_v17  ;;  %1386 = vmatpush1.bf16.msra.mxu1 %v3190_v28  ;;  %v3216_v28 = vld [vmem:[#allocation10 + $0x124] ss:$20 sps:$4 sm:$0xff]   ;;  %v3222_v17 = vld [vmem:[#allocation10 + $0x128] ss:$20 sps:$4 sm:$0xff]  }
 0x1a1   : > { %2218 = vmatprep.subr.bf16.mxu0 %v3559_v5  ;;  %1387 = vmatprep.subr.bf16.mxu1 %v3196_v20  ;;  %v3220_v20 = vld [vmem:[#allocation10 + $0x120] ss:$20 sps:$4 sm:$0xff]   ;;  %3576 = vst [vmem:[#allocation34_spill] sm:$0xff] %v3222_v17 }
 0x1a2   : > { %3575 = vst [vmem:[#allocation33_spill] sm:$0xff] %v3220_v20 }
 0x1a4   : > { %2219 = vmatpush3.bf16.msra.mxu0 %v3202_v11  ;;  %1388 = vmatpush1.bf16.msra.mxu1 %v3200_v27  ;;  %v828_v27 = vpack.c.bf16 %v3129_v6, %v3123_v26  ;;  %v3228_v11 = vld [vmem:[#allocation10 + $0xfc] ss:$20 sps:$4 sm:$0xff]   ;;  %v3239_v26 = vld [vmem:[#allocation10 + $0xd4] ss:$20 sps:$4 sm:$0xff]  }
 0x1a5   : > { %2220 = vmatprep.subr.bf16.mxu0 %v3559_v5  ;;  %1389 = vmatprep.subr.bf16.mxu1 %v3206_v63  ;;  %3577 = vst [vmem:[#allocation35_spill] sm:$0xff] %v3228_v11  ;;  %3580 = vst [vmem:[#allocation38_spill] sm:$0xff] %v3239_v26  ;;  %v3246_v6 = vld [vmem:[#allocation10 + $0xd0] ss:$20 sps:$4 sm:$0xff]  }
 0x1a6   : > { %3581 = vst [vmem:[#allocation39_spill] sm:$0xff] %v3246_v6 }
 0x1a8   : > { %2221 = vmatpush3.bf16.msra.mxu0 %v3212_v3  ;;  %1390 = vmatpush1.bf16.msra.mxu1 %v3210_v12  ;;  %v3233_v12 = vld [vmem:[#allocation10 + $0xf8] ss:$20 sps:$4 sm:$0xff]   ;;  %v3235_v3 = vld [vmem:[#allocation10 + $0x100] ss:$20 sps:$4 sm:$0xff]  }
 0x1a9   : > { %1418 = vmatprep.subr.bf16.mxu0 %v3216_v28  ;;  %2226 = vmatprep.subr.bf16.mxu1 %v3559_v5  ;;  %3578 = vst [vmem:[#allocation36_spill] sm:$0xff] %v3233_v12  ;;  %3579 = vst [vmem:[#allocation37_spill] sm:$0xff] %v3235_v3 }
 0x1ab   : > { %2223 = vmatmul.mubr.bf16.vlgmr.msra.gmra.mxu0 %v3139_v18  ;;  %1408 = vmatmul.mubr.bf16.vlgmr.msra.gmra.mxu1 %v828_v27  ;;  %v3248_v18 = vld [vmem:[#allocation10 + $0xd8] ss:$20 sps:$4 sm:$0xff]  }
 0x1ac   : > { %1419 = vmatpush1.bf16.msra.mxu0 %v3220_v20  ;;  %2227 = vmatpush3.bf16.msra.mxu1 %v3222_v17  ;;  %3582 = vst [vmem:[#allocation40_spill] sm:$0xff] %v3248_v18  ;;  %v3256_v17 = vld [vmem:[#allocation10 + $0xa8] ss:$20 sps:$4 sm:$0xff]   ;;  %v3258_v20 = vld [vmem:[#allocation10 + $0xb0] ss:$20 sps:$4 sm:$0xff]  }
 0x1ad   : > { %1420 = vmatprep.subr.bf16.mxu0 %v3228_v11  ;;  %2228 = vmatprep.subr.bf16.mxu1 %v3559_v5  ;;  %v3252_v11 = vld [vmem:[#allocation10 + $0xac] ss:$20 sps:$4 sm:$0xff]   ;;  %3584 = vst [vmem:[#allocation42_spill] sm:$0xff] %v3256_v17  ;;  %3585 = vst [vmem:[#allocation43_spill] sm:$0xff] %v3258_v20 }
 0x1ae   : > { %1450 = vmatprep.mubr.bf16.mxu0 %v3560_v62  ;;  %2242 = vmatprep.mubr.msk.bf16.mxu1 %vm2786_vm0, %v3559_v5  ;;  %3583 = vst [vmem:[#allocation41_spill] sm:$0xff] %v3252_v11 }
 0x1b0   : > { %1421 = vmatpush1.bf16.msra.mxu0 %v3233_v12  ;;  %2229 = vmatpush3.bf16.msra.mxu1 %v3235_v3  ;;  %v3262_v3 = vld [vmem:[#allocation10 + $0x84] ss:$20 sps:$4 sm:$0xff]   ;;  %v3268_v12 = vld [vmem:[#allocation10 + $0x88] ss:$20 sps:$4 sm:$0xff]  }
 0x1b1   : > { %1422 = vmatprep.subr.bf16.mxu0 %v3239_v26  ;;  %2230 = vmatprep.subr.bf16.mxu1 %v3559_v5  ;;  %3586 = vst [vmem:[#allocation44_spill] sm:$0xff] %v3262_v3  ;;  %v3266_v26 = vld [vmem:[#allocation10 + $0x80] ss:$20 sps:$4 sm:$0xff]   ;;  %3588 = vst [vmem:[#allocation46_spill] sm:$0xff] %v3268_v12 }
 0x1b2   : > { %3587 = vst [vmem:[#allocation45_spill] sm:$0xff] %v3266_v26 }
 0x1b4   : > { %1423 = vmatpush1.bf16.msra.mxu0 %v3246_v6  ;;  %2231 = vmatpush3.bf16.msra.mxu1 %v3248_v18  ;;  %v3272_v18 = vld [vmem:[#allocation10 + $0x5c] ss:$20 sps:$4 sm:$0xff]   ;;  %v3278_v6 = vld [vmem:[#allocation10 + $0x60] ss:$20 sps:$4 sm:$0xff]  }
 0x1b5   : > { %1424 = vmatprep.subr.bf16.mxu0 %v3252_v11  ;;  %2232 = vmatprep.subr.bf16.mxu1 %v3559_v5  ;;  %3589 = vst [vmem:[#allocation47_spill] sm:$0xff] %v3272_v18  ;;  %v3276_v11 = vld [vmem:[#allocation10 + $0x58] ss:$20 sps:$4 sm:$0xff]  }
 0x1b8   : > { %1425 = vmatpush1.bf16.msra.mxu0 %v3256_v17  ;;  %2233 = vmatpush3.bf16.msra.mxu1 %v3258_v20  ;;  %v3282_v20 = vld [vmem:[#allocation10 + $0x34] ss:$20 sps:$4 sm:$0xff]   ;;  %v3288_v17 = vld [vmem:[#allocation10 + $0x38] ss:$20 sps:$4 sm:$0xff]  }
 0x1b9   : > { %1426 = vmatprep.subr.bf16.mxu0 %v3262_v3  ;;  %2234 = vmatprep.subr.bf16.mxu1 %v3559_v5  ;;  %v3286_v3 = vld [vmem:[#allocation10 + $0x30] ss:$20 sps:$4 sm:$0xff]  }
 0x1bc   : > { %1427 = vmatpush1.bf16.msra.mxu0 %v3266_v26  ;;  %2235 = vmatpush3.bf16.msra.mxu1 %v3268_v12  ;;  %v3292_v12 = vld [vmem:[#allocation10 + $0xc] ss:$20 sps:$4 sm:$0xff]   ;;  %v3298_v26 = vld [vmem:[#allocation10 + $0x10] ss:$20 sps:$4 sm:$0xff]  }
 0x1bd   : > { %1428 = vmatprep.subr.bf16.mxu0 %v3272_v18  ;;  %2236 = vmatprep.subr.bf16.mxu1 %v3559_v5  ;;  %v3296_v18 = vld [vmem:[#allocation10 + $0x8] ss:$20 sps:$4 sm:$0xff]  }
 0x1c0   : > { %1429 = vmatpush1.bf16.msra.mxu0 %v3276_v11  ;;  %2237 = vmatpush3.bf16.msra.mxu1 %v3278_v6 }
 0x1c1   : > { %1430 = vmatprep.subr.bf16.mxu0 %v3282_v20  ;;  %2238 = vmatprep.subr.bf16.mxu1 %v3559_v5 }
 0x1c4   : > { %1431 = vmatpush1.bf16.msra.mxu0 %v3286_v3  ;;  %2239 = vmatpush3.bf16.msra.mxu1 %v3288_v17 }
 0x1c5   : > { %1432 = vmatprep.subr.bf16.mxu0 %v3292_v12  ;;  %2240 = vmatprep.subr.bf16.mxu1 %v3559_v5 }
 0x1c8   : > { %1433 = vmatpush1.bf16.msra.mxu0 %v3296_v18  ;;  %2241 = vmatpush3.bf16.msra.mxu1 %v3298_v26 }
 0x1c9   : > { %1604 = vmatprep.subr.bf16.mxu0 %v2971_v29  ;;  %1645 = vmatprep.subr.bf16.mxu1 %v2973_v30 }
 0x1cb   : > { %1451 = vmatmul.mubr.bf16.vlgmr.msra.gmra.mxu0 %v828_v27  ;;  %2243 = vmatmul.mubr.bf16.vlgmr.msra.gmra.mxu1 %v828_v27 }
 0x1cc   : > { %1605 = vmatpush1.bf16.msra.mxu0 %v2975_v31  ;;  %1646 = vmatpush1.bf16.msra.mxu1 %v2977_v32 }
 0x1cd   : > { %1606 = vmatprep.subr.bf16.mxu0 %v2983_v33  ;;  %1647 = vmatprep.subr.bf16.mxu1 %v2985_v34 }
 0x1ce   : > { %1636 = vmatprep.mubr.bf16.mxu0 %v3560_v62  ;;  %1677 = vmatprep.mubr.bf16.mxu1 %v3560_v62 }
 0x1d0   : > { %1607 = vmatpush1.bf16.msra.mxu0 %v2987_v35  ;;  %1648 = vmatpush1.bf16.msra.mxu1 %v2989_v36 }
 0x1d1   : > { %1608 = vmatprep.subr.bf16.mxu0 %v2995_v37  ;;  %1649 = vmatprep.subr.bf16.mxu1 %v2997_v38 }
 0x1d4   : > { %1609 = vmatpush1.bf16.msra.mxu0 %v2999_v39  ;;  %1650 = vmatpush1.bf16.msra.mxu1 %v3001_v40 }
 0x1d5   : > { %1610 = vmatprep.subr.bf16.mxu0 %v3007_v41  ;;  %1651 = vmatprep.subr.bf16.mxu1 %v3009_v42 }
 0x1d8   : > { %1611 = vmatpush1.bf16.msra.mxu0 %v3011_v43  ;;  %1652 = vmatpush1.bf16.msra.mxu1 %v3013_v44  ;;  %v731_v44 = vld [vmem:[%s3502_s3] sm:$0x3] }
 0x1d9   : > { %1612 = vmatprep.subr.bf16.mxu0 %v3019_v45  ;;  %1653 = vmatprep.subr.bf16.mxu1 %v3021_v46  ;;  %v3590_v46 = vsub.s32 1, %v3071_v1 }
 0x1dc   : > { %1613 = vmatpush1.bf16.msra.mxu0 %v3023_v47  ;;  %1654 = vmatpush1.bf16.msra.mxu1 %v3025_v48  ;;  %v3345_v47 = vrot.slane %v731_v44, %v3590_v46 }
 0x1dd   : > { %1614 = vmatprep.subr.bf16.mxu0 %v3029_v49  ;;  %1655 = vmatprep.subr.bf16.mxu1 %v3031_v50  ;;  %v3591_v50 = vsub.s32 0, %v3071_v1 }
 0x1e0   : > { %1615 = vmatpush1.bf16.msra.mxu0 %v3035_v51  ;;  %1656 = vmatpush1.bf16.msra.mxu1 %v3037_v52  ;;  %v3349_v51 = vrot.slane %v731_v44, %v3591_v50 }
 0x1e1   : > { %1616 = vmatprep.subr.bf16.mxu0 %v3041_v53  ;;  %1657 = vmatprep.subr.bf16.mxu1 %v3043_v54 }
 0x1e4   : > { %1617 = vmatpush1.bf16.msra.mxu0 %v3047_v55  ;;  %1658 = vmatpush1.bf16.msra.mxu1 %v3049_v56 }
 0x1e5   : > { %1618 = vmatprep.subr.bf16.mxu0 %v3053_v57  ;;  %1659 = vmatprep.subr.bf16.mxu1 %v3055_v58 }
 0x1e8   : > { %1619 = vmatpush1.bf16.msra.mxu0 %v3059_v59  ;;  %1660 = vmatpush1.bf16.msra.mxu1 %v3061_v60 }
 0x1e9   : > { %2246 = vmatprep.subr.bf16.mxu0 %v3559_v5  ;;  %1726 = vmatprep.subr.bf16.mxu1 %v3065_v61 }
 0x24b   : > { %v1074_v29 = vpop.f32.mrf.mxu0  ;;  %v1117_v31 = vpop.f32.mrf.mxu1 }
 0x24d   : > { %v1076_v30 = vpop.f32.mrf.mxu0  ;;  %v1119_v33 = vpop.f32.mrf.mxu1 }
 0x24f   : > { %v1078_v32 = vpop.f32.mrf.mxu0  ;;  %v1121_v35 = vpop.f32.mrf.mxu1 }
 0x251   : > { %v1080_v34 = vpop.f32.mrf.mxu0  ;;  %v1123_v38 = vpop.f32.mrf.mxu1 }
 0x26b   : > { %v1160_v36 = vpop.f32.mrf.mxu0  ;;  %v1409_v40 = vpop.f32.mrf.mxu1 }
 0x26c   : > { %v1410_v49 = vadd.f32 %v1409_v40, %v1074_v29 }
 0x26d   : > { %v2224_v37 = vpop.f32.mrf.mxu0  ;;  %v1411_v42 = vpop.f32.mrf.mxu1 }
 0x26e   : > { %v1412_v45 = vadd.f32 %v1411_v42, %v1076_v30  ;;  %v1513_v54 = vadd.f32 %v3349_v51, %v1410_v49 }
 0x26f   : > { %v1163_v39 = vpop.f32.mrf.mxu0  ;;  %v1413_v43 = vpop.f32.mrf.mxu1 }
 0x270   : > { %v1514_v52 = vadd.f32 %v3345_v47, %v1412_v45  ;;  %v1414_v55 = vadd.f32 %v1413_v43, %v1078_v32  ;;  %v2119_v58 = vmul.f32 -1.442695, %v1513_v54 }
 0x271   : > { %v2225_v41 = vpop.f32.mrf.mxu0  ;;  %v1415_v48 = vpop.f32.mrf.mxu1 }
 0x272   : > { %v1416_v53 = vadd.f32 %v1415_v48, %v1080_v34  ;;  %v2120_v56 = vmul.f32 -1.442695, %v1514_v52  ;;  %v1515_v59 = vadd.f32 %v3349_v51, %v1414_v55 }
 0x274   : > { %v1516_v57 = vadd.f32 %v3345_v47, %v1416_v53  ;;  %2565 = vpow2.f32 %v2120_v56  ;;  %v2121_v61 = vmul.f32 -1.442695, %v1515_v59 }
 0x275   : > { %2567 = vpow2.f32 %v2119_v58 }
 0x276   : > { %v2122_v60 = vmul.f32 -1.442695, %v1516_v57 }
 0x278   : > { %2569 = vpow2.f32 %v2122_v60 }
 0x279   : > { %2571 = vpow2.f32 %v2121_v61 }
 0x281   : > { %v2566_v46 = vpop.eup %2565 }
 0x282   : > { %v2568_v50 = vpop.eup %2567  ;;  %v1530_v52 = vadd.f32 1.0, %v2566_v46 }
 0x283   : > { %v1529_v55 = vadd.f32 1.0, %v2568_v50 }
 0x28b   : > { %v1452_v27 = vpop.f32.mrf.mxu0  ;;  %v1495_v1 = vpop.f32.mrf.mxu1 }
 0x28c   : > { %v1453_v29 = vadd.f32 %v1452_v27, %v1117_v31  ;;  %v1496_v54 = vadd.f32 %v1495_v1, %v1160_v36  ;;  %v3592_v36 = vld [vmem:[#allocation17_spill] sm:$0xff] }
 0x28d   : > { %v1454_v30 = vpop.f32.mrf.mxu0  ;;  %v2244_v37 = vpop.f32.mrf.mxu1 }
 0x28e   : > { %v1551_v34 = vadd.f32 %v1453_v29, %v3087_v13  ;;  %v1455_v44 = vadd.f32 %v1454_v30, %v1119_v33  ;;  %v2570_v13 = vpop.eup %2569 }
 0x28f   : > { %v1456_v32 = vpop.f32.mrf.mxu0  ;;  %v1498_v40 = vpop.f32.mrf.mxu1 }
 0x290   : > { %v2123_v41 = vmul.f32 -1.442695, %v1551_v34  ;;  %v1457_v42 = vadd.f32 %v1456_v32, %v1121_v35  ;;  %v1552_v31 = vadd.f32 %v1455_v44, %v3091_v16  ;;  %v2572_v57 = vpop.eup %2571  ;;  %v1532_v35 = vadd.f32 1.0, %v2570_v13 }
 0x291   : > { %v2245_v43 = vpop.f32.mrf.mxu1  ;;  %v1458_v49 = vpop.f32.mrf.mxu0  ;;  %v1499_v58 = vadd.f32 %v1498_v40, %v1163_v39  ;;  %v1531_v60 = vadd.f32 1.0, %v2572_v57  ;;  %v3598_v57 = vld [vmem:[#allocation23_spill] sm:$0xff] }
 0x292   : > { %2573 = vpow2.f32 %v2123_v41  ;;  %v1554_v45 = vadd.f32 %v1457_v42, %v3093_v19  ;;  %v1459_v53 = vadd.f32 %v1458_v49, %v1123_v38  ;;  %v2125_v56 = vmul.f32 -1.442695, %v1552_v31 }
 0x293   : > { %v1553_v19 = vadd.f32 %v1496_v54, %v3104_v7  ;;  %v1556_v38 = vadd.f32 %v1499_v58, %v3592_v36  ;;  %v3605_v58 = vld [vmem:[#allocation32_spill] sm:$0xff]  ;;  %v3609_v36 = vld [vmem:[#allocation35_spill] sm:$0xff] }
 0x294   : > { %v2124_v48 = vmul.f32 -1.442695, %v1554_v45  ;;  %v1555_v33 = vadd.f32 %v1459_v53, %v3098_v23 }
 0x296   : > { %2575 = vpow2.f32 %v2124_v48  ;;  %v2126_v61 = vmul.f32 -1.442695, %v1555_v33  ;;  %v3603_v33 = vld [vmem:[#allocation30_spill] sm:$0xff] }
 0x297   : > { %2577 = vrcp.f32 %v1530_v52 }
 0x298   : > { %2579 = vrcp.f32 %v1529_v55 }
 0x299   : > { %2581 = vpow2.f32 %v2125_v56 }
 0x29a   : > { %2583 = vrcp.f32 %v1532_v35  ;;  %v3602_v35 = vld [vmem:[#allocation28_spill] sm:$0xff] }
 0x29b   : > { %2585 = vtanh.f32 %v1553_v19  ;;  %v3604_v19 = vld [vmem:[#allocation29_spill] sm:$0xff] }
 0x29f   : > { %v2574_v59 = vpop.eup %2573 }
 0x2a0   : > { %v1563_v16 = vadd.f32 1.0, %v2574_v59  ;;  %v3606_v59 = vld [vmem:[#allocation31_spill] sm:$0xff] }
 0x2a2   : > { %2587 = vrcp.f32 %v1563_v16  ;;  %v3607_v16 = vld [vmem:[#allocation33_spill] sm:$0xff] }
 0x2a3   : > { %2589 = vrcp.f32 %v1531_v60  ;;  %v2576_v27 = vpop.eup %2575 }
 0x2a4   : > { %2591 = vpow2.f32 %v2126_v61  ;;  %v1564_v1 = vadd.f32 1.0, %v2576_v27  ;;  %v2578_v23 = vpop.eup %2577  ;;  %v3608_v61 = vld [vmem:[#allocation34_spill] sm:$0xff]  ;;  %v3613_v27 = vld [vmem:[#allocation39_spill] sm:$0xff] }
 0x2a5   : > { %2593 = vtanh.f32 %v1556_v38  ;;  %v2580_v7 = vpop.eup %2579  ;;  %v1547_v39 = vmul.f32 %v2578_v23, %v3116_v21  ;;  %v3612_v38 = vld [vmem:[#allocation38_spill] sm:$0xff]  ;;  %v3615_v23 = vld [vmem:[#allocation41_spill] sm:$0xff] }
 0x2a6   : > { %2595 = vrcp.f32 %v1564_v1  ;;  %v2582_v29 = vpop.eup %2581  ;;  %v1543_v34 = vmul.f32 %v2580_v7, %v3110_v9  ;;  %v3614_v1 = vld [vmem:[#allocation40_spill] sm:$0xff]  ;;  %v3617_v7 = vld [vmem:[#allocation43_spill] sm:$0xff] }
 0x2a7   : > { %v2584_v30 = vpop.eup %2583  ;;  %v1575_v40 = vadd.f32 1.0, %v2582_v29  ;;  %v3618_v29 = vld [vmem:[#allocation44_spill] sm:$0xff] }
 0x2a8   : > { %v2586_v37 = vpop.eup %2585  ;;  %v1549_v42 = vadd.f32 %v1547_v39, %v1543_v34  ;;  %v1548_v45 = vmul.f32 %v2584_v30, %v3120_v0  ;;  %v3619_v39 = vld [vmem:[#allocation45_spill] sm:$0xff]  ;;  %v3620_v30 = vld [vmem:[#allocation46_spill] sm:$0xff] }
 0x2a9   : > { %2597 = vrcp.f32 %v1575_v40 }
 0x2af   : > { %v2588_v32 = vpop.eup %2587 }
 0x2b0   : > { %v2590_v41 = vpop.eup %2589  ;;  %v1583_v43 = vmul.f32 %v2588_v32, %v2586_v37  ;;  %v3621_v37 = vld [vmem:[#allocation47_spill] sm:$0xff] }
 0x2b1   : > { %v2592_v44 = vpop.eup %2591  ;;  %v1544_v49 = vmul.f32 %v2590_v41, %v3113_v10 }
 0x2b2   : > { %v3364_v46 = vadd.f32 %v1583_v43, %v1549_v42  ;;  %v2594_v48 = vpop.eup %2593  ;;  %v1576_v9 = vadd.f32 1.0, %v2592_v44 }
 0x2b3   : > { %v2596_v21 = vpop.eup %2595  ;;  %v1550_v50 = vadd.f32 %v1548_v45, %v1544_v49 }
 0x2b4   : > { %2599 = vtanh.f32 %v3364_v46  ;;  %v1584_v31 = vmul.f32 %v2596_v21, %v2594_v48 }
 0x2b5   : > { %2601 = vrcp.f32 %v1576_v9 }
 0x2b6   : > { %v3368_v52 = vadd.f32 %v1584_v31, %v1550_v50  ;;  %v2598_v0 = vpop.eup %2597 }
 0x2b8   : > { %2603 = vtanh.f32 %v3368_v52 }
 0x2c1   : > { %v2600_v53 = vpop.eup %2599 }
 0x2c2   : > { %v1589_v13 = vmul.f32 %v2600_v53, %v2598_v0  ;;  %v2602_v54 = vpop.eup %2601 }
 0x2c4   : > { %1591 = vst [vmem:[%s3125_s11 + $0x8] sm:$0xff] %v1589_v13  ;;  %v1601_v60 = vpack.c.bf16 %v1589_v13, %v1589_v13 }
 0x2c5   : > { %v2604_v55 = vpop.eup %2603 }
 0x2c6   : > { %v1590_v10 = vmul.f32 %v2604_v55, %v2602_v54  ;;  %v3622_v55 = vld [vmem:[#allocation15_spill] sm:$0xff] }
 0x2c8   : > { %1592 = vst [vmem:[%s3125_s11 + $0x10] sm:$0xff] %v1590_v10  ;;  %v1603_v56 = vpack.c.bf16 %v1590_v10, %v1590_v10 }
 0x2ca   : > { %1637 = vmatmul.mubr.bf16.vlgmr.msra.gmra.mxu0 %v1603_v56  ;;  %1678 = vmatmul.mubr.bf16.vlgmr.msra.gmra.mxu1 %v1603_v56 }
 0x2cb   : > { %2247 = vmatpush3.bf16.msra.mxu0 %v3136_v14  ;;  %1727 = vmatpush1.bf16.msra.mxu1 %v3134_v22  ;;  %v3593_v22 = vld [vmem:[#allocation19_spill] sm:$0xff]  ;;  %v3594_v14 = vld [vmem:[#allocation21_spill] sm:$0xff] }
 0x2cc   : > { %2248 = vmatprep.subr.bf16.mxu0 %v3559_v5  ;;  %1728 = vmatprep.subr.bf16.mxu1 %v3141_v2  ;;  %v3595_v2 = vld [vmem:[#allocation20_spill] sm:$0xff] }
 0x2cd   : > { %2262 = vmatprep.mubr.msk.bf16.mxu0 %vm2786_vm0, %v3559_v5  ;;  %1758 = vmatprep.mubr.bf16.mxu1 %v3560_v62 }
 0x2cf   : > { %2249 = vmatpush3.bf16.msra.mxu0 %v3149_v15  ;;  %1729 = vmatpush1.bf16.msra.mxu1 %v3147_v4  ;;  %v3596_v15 = vld [vmem:[#allocation22_spill] sm:$0xff]  ;;  %v3597_v4 = vld [vmem:[#allocation24_spill] sm:$0xff] }
 0x2d0   : > { %2250 = vmatprep.subr.bf16.mxu0 %v3559_v5  ;;  %1730 = vmatprep.subr.bf16.mxu1 %v3153_v25  ;;  %v3599_v25 = vld [vmem:[#allocation25_spill] sm:$0xff] }
 0x2d3   : > { %2251 = vmatpush3.bf16.msra.mxu0 %v3162_v24  ;;  %1731 = vmatpush1.bf16.msra.mxu1 %v3160_v8  ;;  %v3600_v8 = vld [vmem:[#allocation27_spill] sm:$0xff]  ;;  %v3601_v24 = vld [vmem:[#allocation26_spill] sm:$0xff] }
 0x2d4   : > { %2252 = vmatprep.subr.bf16.mxu0 %v3559_v5  ;;  %1732 = vmatprep.subr.bf16.mxu1 %v3593_v22 }
 0x2d7   : > { %2253 = vmatpush3.bf16.msra.mxu0 %v3594_v14  ;;  %1733 = vmatpush1.bf16.msra.mxu1 %v3595_v2 }
 0x2d8   : > { %2254 = vmatprep.subr.bf16.mxu0 %v3559_v5  ;;  %1734 = vmatprep.subr.bf16.mxu1 %v3596_v15  ;;  %v3623_v15 = vld [vmem:[#allocation16_spill] sm:$0xff] }
 0x2db   : > { %2255 = vmatpush3.bf16.msra.mxu0 %v3597_v4  ;;  %1735 = vmatpush1.bf16.msra.mxu1 %v3598_v57 }
 0x2dc   : > { %2256 = vmatprep.subr.bf16.mxu0 %v3559_v5  ;;  %1736 = vmatprep.subr.bf16.mxu1 %v3599_v25 }
 0x2df   : > { %2257 = vmatpush3.bf16.msra.mxu0 %v3600_v8  ;;  %1737 = vmatpush1.bf16.msra.mxu1 %v3601_v24 }
 0x2e0   : > { %2258 = vmatprep.subr.bf16.mxu0 %v3559_v5  ;;  %1738 = vmatprep.subr.bf16.mxu1 %v3602_v35 }
 0x2e3   : > { %2259 = vmatpush3.bf16.msra.mxu0 %v3603_v33  ;;  %1739 = vmatpush1.bf16.msra.mxu1 %v3604_v19  ;;  %v3624_v19 = vld [vmem:[#allocation18_spill] sm:$0xff] }
 0x2e4   : > { %2260 = vmatprep.subr.bf16.mxu0 %v3559_v5  ;;  %1740 = vmatprep.subr.bf16.mxu1 %v3206_v63  ;;  %v3610_v63 = vld [vmem:[#allocation36_spill] sm:$0xff] }
 0x2e7   : > { %2261 = vmatpush3.bf16.msra.mxu0 %v3605_v58  ;;  %1741 = vmatpush1.bf16.msra.mxu1 %v3606_v59 }
 0x2e8   : > { %1767 = vmatprep.subr.bf16.mxu0 %v3216_v28  ;;  %2266 = vmatprep.subr.bf16.mxu1 %v3559_v5  ;;  %v3611_v28 = vld [vmem:[#allocation37_spill] sm:$0xff] }
 0x2ea   : > { %2263 = vmatmul.mubr.bf16.vlgmr.msra.gmra.mxu0 %v1603_v56  ;;  %1759 = vmatmul.mubr.bf16.vlgmr.msra.gmra.mxu1 %v1601_v60 }
 0x2eb   : > { %1768 = vmatpush1.bf16.msra.mxu0 %v3607_v16  ;;  %2267 = vmatpush3.bf16.msra.mxu1 %v3608_v61 }
 0x2ec   : > { %1769 = vmatprep.subr.bf16.mxu0 %v3609_v36  ;;  %2268 = vmatprep.subr.bf16.mxu1 %v3559_v5 }
 0x2ed   : > { %1799 = vmatprep.mubr.bf16.mxu0 %v3560_v62  ;;  %2282 = vmatprep.mubr.msk.bf16.mxu1 %vm2786_vm0, %v3559_v5  ;;  %v3616_v62 = vld [vmem:[#allocation42_spill] sm:$0xff] }
 0x2ef   : > { %1770 = vmatpush1.bf16.msra.mxu0 %v3610_v63  ;;  %2269 = vmatpush3.bf16.msra.mxu1 %v3611_v28 }
 0x2f0   : > { %1771 = vmatprep.subr.bf16.mxu0 %v3612_v38  ;;  %2270 = vmatprep.subr.bf16.mxu1 %v3559_v5 }
 0x2f3   : > { %1772 = vmatpush1.bf16.msra.mxu0 %v3613_v27  ;;  %2271 = vmatpush3.bf16.msra.mxu1 %v3614_v1 }
 0x2f4   : > { %1773 = vmatprep.subr.bf16.mxu0 %v3615_v23  ;;  %2272 = vmatprep.subr.bf16.mxu1 %v3559_v5 }
 0x2f7   : > { %1774 = vmatpush1.bf16.msra.mxu0 %v3616_v62  ;;  %2273 = vmatpush3.bf16.msra.mxu1 %v3617_v7 }
 0x2f8   : > { %1775 = vmatprep.subr.bf16.mxu0 %v3618_v29  ;;  %2274 = vmatprep.subr.bf16.mxu1 %v3559_v5 }
 0x2fb   : > { %1776 = vmatpush1.bf16.msra.mxu0 %v3619_v39  ;;  %2275 = vmatpush3.bf16.msra.mxu1 %v3620_v30 }
 0x2fc   : > { %1777 = vmatprep.subr.bf16.mxu0 %v3621_v37  ;;  %2276 = vmatprep.subr.bf16.mxu1 %v3559_v5 }
 0x2ff   : > { %1778 = vmatpush1.bf16.msra.mxu0 %v3276_v11  ;;  %2277 = vmatpush3.bf16.msra.mxu1 %v3278_v6 }
 0x300   : > { %1779 = vmatprep.subr.bf16.mxu0 %v3282_v20  ;;  %2278 = vmatprep.subr.bf16.mxu1 %v3559_v5 }
 0x303   : > { %1780 = vmatpush1.bf16.msra.mxu0 %v3286_v3  ;;  %2279 = vmatpush3.bf16.msra.mxu1 %v3288_v17 }
 0x304   : > { %1781 = vmatprep.subr.bf16.mxu0 %v3292_v12  ;;  %2280 = vmatprep.subr.bf16.mxu1 %v3559_v5 }
 0x307   : > { %1782 = vmatpush1.bf16.msra.mxu0 %v3296_v18  ;;  %2281 = vmatpush3.bf16.msra.mxu1 %v3298_v26 }
 0x30a   : > { %1800 = vmatmul.mubr.bf16.vlgmr.msra.gmra.mxu0 %v1601_v60  ;;  %2283 = vmatmul.mubr.bf16.vlgmr.msra.gmra.mxu1 %v1601_v60 }
 0x38a   : > { %v1638_v11 = vpop.f32.mrf.mxu0  ;;  %v1679_v6 = vpop.f32.mrf.mxu1 }
 0x38c   : > { %v1640_v34 = vpop.f32.mrf.mxu0  ;;  %v1681_v20 = vpop.f32.mrf.mxu1 }
 0x38e   : > { %v1642_v32 = vpop.f32.mrf.mxu0  ;;  %v1683_v40 = vpop.f32.mrf.mxu1 }
 0x390   : > { %v1643_v41 = vpop.f32.mrf.mxu0  ;;  %v1684_v3 = vpop.f32.mrf.mxu1 }
 0x3aa   : > { %v1720_v42 = vpop.f32.mrf.mxu0  ;;  %v1760_v17 = vpop.f32.mrf.mxu1 }
 0x3ab   : > { %v1761_v26 = vadd.f32 %v1760_v17, %v1638_v11 }
 0x3ac   : > { %v2264_v43 = vpop.f32.mrf.mxu0  ;;  %v1762_v12 = vpop.f32.mrf.mxu1 }
 0x3ad   : > { %v1763_v48 = vadd.f32 %v1762_v12, %v1640_v34  ;;  %v1848_v21 = vadd.f32 %v1761_v26, %v3349_v51 }
 0x3ae   : > { %v1723_v44 = vpop.f32.mrf.mxu0  ;;  %v1764_v5 = vpop.f32.mrf.mxu1 }
 0x3af   : > { %v1849_v49 = vadd.f32 %v1763_v48, %v3345_v47  ;;  %v2127_v50 = vmul.f32 -1.442695, %v1848_v21 }
 0x3b0   : > { %v2265_v45 = vpop.f32.mrf.mxu0  ;;  %v1765_v18 = vpop.f32.mrf.mxu1 }
 0x3b1   : > { %v2128_v9 = vmul.f32 -1.442695, %v1849_v49 }
 0x3b3   : > { %2605 = vpow2.f32 %v2128_v9 }
 0x3b4   : > { %2607 = vpow2.f32 %v2127_v50 }
 0x3c0   : > { %v2606_v51 = vpop.eup %2605 }
 0x3c1   : > { %v2608_v25 = vpop.eup %2607  ;;  %v1857_v8 = vadd.f32 1.0, %v2606_v51 }
 0x3c2   : > { %v1856_v35 = vadd.f32 1.0, %v2608_v25 }
 0x3ca   : > { %v1801_v31 = vpop.f32.mrf.mxu0  ;;  %v1842_v0 = vpop.f32.mrf.mxu1 }
 0x3cb   : > { %v1802_v53 = vadd.f32 %v1801_v31, %v1679_v6  ;;  %v1843_v24 = vadd.f32 %v1842_v0, %v1720_v42 }
 0x3cc   : > { %v1803_v13 = vpop.f32.mrf.mxu0  ;;  %v2284_v54 = vpop.f32.mrf.mxu1 }
 0x3cd   : > { %v1867_v10 = vadd.f32 %v1802_v53, %v3622_v55  ;;  %v1804_v56 = vadd.f32 %v1803_v13, %v1681_v20  ;;  %v1869_v58 = vadd.f32 %v1843_v24, %v3624_v19 }
 0x3ce   : > { %v1805_v22 = vpop.f32.mrf.mxu0  ;;  %v1845_v14 = vpop.f32.mrf.mxu1 }
 0x3cf   : > { %v2129_v2 = vmul.f32 -1.442695, %v1867_v10  ;;  %v1868_v4 = vadd.f32 %v1804_v56, %v3623_v15 }
 0x3d0   : > { %v1806_v47 = vpop.f32.mrf.mxu0  ;;  %v2285_v57 = vpop.f32.mrf.mxu1 }
 0x3d1   : > { %2609 = vpow2.f32 %v2129_v2  ;;  %v2130_v33 = vmul.f32 -1.442695, %v1868_v4 }
 0x3d2   : > { %2611 = vrcp.f32 %v1857_v8 }
 0x3d3   : > { %2613 = vrcp.f32 %v1856_v35 }
 0x3d4   : > { %2615 = vpow2.f32 %v2130_v33 }
 0x3d5   : > { %2617 = vtanh.f32 %v1869_v58 }
 0x3de   : > { %v2610_v59 = vpop.eup %2609 }
 0x3df   : > { %v1873_v60 = vadd.f32 1.0, %v2610_v59  ;;  %v2612_v16 = vpop.eup %2611 }
 0x3e0   : > { %v2614_v61 = vpop.eup %2613  ;;  %v1865_v63 = vmul.f32 %v2612_v16, %v3368_v52 }
 0x3e1   : > { %2619 = vrcp.f32 %v1873_v60  ;;  %v2616_v36 = vpop.eup %2615  ;;  %v1863_v38 = vmul.f32 %v2614_v61, %v3364_v46 }
 0x3e2   : > { %v2618_v28 = vpop.eup %2617  ;;  %v1879_v1 = vadd.f32 1.0, %v2616_v36 }
 0x3e3   : > { %v1866_v23 = vadd.f32 %v1865_v63, %v1863_v38 }
 0x3e4   : > { %2621 = vrcp.f32 %v1879_v1 }
 0x3ee   : > { %v2620_v27 = vpop.eup %2619 }
 0x3ef   : > { %v1883_v62 = vmul.f32 %v2620_v27, %v2618_v28 }
 0x3f1   : > { %v1884_v7 = vadd.f32 %v1883_v62, %v1866_v23  ;;  %v2622_v29 = vpop.eup %2621 }
 0x3f3   : > { %2623 = vtanh.f32 %v1884_v7 }
 0x400   : > { %v2624_v39 = vpop.eup %2623 }
 0x401   : > { %v1886_v46 = vmul.f32 %v2624_v39, %v2622_v29 }
 0x403   : > { %1887 = vst [vmem:[%s3125_s11] sm:$0xff] %v1886_v46 }
 0x404   : > { %2718 = shalt.err (!%p2715_p9)
}
 0x405   : > { %s2719_s24 = scalar_lea.hbm %s3453_s15, 896  ;;  %s2723_s11 = scalar_lea.hbm %s3504_s5, 1792 }
 0x406   : > { %p2720_p13 = scmp.ne.s32.totalorder %s3453_s15, %s2719_s24  ;;  %p2724_p4 = scmp.lt.s32.totalorder %s3453_s15, %s3504_s5 }
 0x407   : > { %p2725_p8 = scmp.lt.s32.totalorder %s2723_s11, %s2719_s24 }
 0x408   : > { %p2721_p5 = pnand %p2720_p13, %p3625_p10 }
 0x409   : > { %p2726_p7 = por %p2725_p8, %p2724_p4 }
 0x40a   : > { %p2722_p0 = pneg %p2721_p5 }
 0x40c   : > { %p2727_p11 = pnand %p2726_p7, %p2722_p0 }
 0x40e   : > { %2730 = shalt.err (!%p2727_p11)
}
 0x40f   : > { %s2788_s29 = smov 128   ;;  %s2789_s10 = smov 8  }
 0x410   : > { %2301 = dma.vmem_to_hbm [thread:$0]  (%p3625_p10), %s3455_s7, 896, %s3453_s15, %s1889_s16, %s2788_s29, %s2788_s29, %s2789_s10  }
 0x411 PF: > { %s1917_s12 = sand.u32 1, %s2761_s18   ;;  %p3626_p1 = scmp.ne.s32.totalorder %s3545_s25, 0 }
 0x412   : > { %p3627_p2 = scmp.ge.s32.totalorder %s2773_s21, 2  ;;  %s1918_s27 = scalar_lea.sflag [#allocation7], %s1917_s12 }
 0x414   : > { %p2315_p6 = pnand %p3627_p2, %p3626_p1 }
 0x416   : > { %p2316_p12 = pneg %p2315_p6 }
 0x418   : > { %2756 = dma.done.wait (%p2316_p12), %s1918_s27, 896  }
 0x419   : > { %2758 = vsyncadd (%p2316_p12), %s1918_s27, 4294966400  ;;  %p19_p3 = scmp.ge.s32.totalorder %s2892_s17, 4   ;;  %s3628_s18 = smov %s2765_s19 }
 0x41a   : > { %s3629_s19 = smov %s2769_s20  ;;  %s3630_s20 = smov %s2901_s28 }
 0x41b   : > { %s3631_s21 = smov %s2892_s17  ;;  %21 = sbr.rel (!%p19_p3) target bundleno = 6 (0x6), region = 93 }
 0x420   :  { %1923 = vsyncpa [#allocation6], 1 }
 0x421   :  { %1925 = vsyncpa [#allocation6 + $0x1], 1 }
 0x422   :  { %1926 = vsyncpa [#allocation9], 1 }
 0x423   :  { %1927 = vsyncpa [#allocation7], 1 }
 0x424   :  { %1929 = vsyncpa [#allocation7 + $0x1], 1 }

</bundles_post_ra>
